<compile_context>
chip_gen: v6e
topology: v6e:2x2x1
jax: 0.10.0
libtpu: 0.0.40
codegen_flags: <defaults>
</compile_context>

<pallas_src>
import jax
import jax.numpy as jnp
import numpy as np
from jax.experimental import pallas as pl
from jax.experimental.pallas import tpu as pltpu


_KSIZE = 3
_STRIDE = 2
_PAD = 1
_N_CONV = 4


def _conv_out(n):
    return (n + 2 * _PAD - _KSIZE) // _STRIDE + 1


# ----------------------------------------------------------------------------
# Fused forward kernel
# ----------------------------------------------------------------------------
def _make_kernel(n_layers, oh_last):
    def kernel(*refs):
        x_ref = refs[0]
        layer_refs = refs[1:1 + 3 * n_layers]
        (fsel_ref, pt_ref, pp_ref, fcw_ref, fcb_ref,
         o_ref) = refs[1 + 3 * n_layers:]

        # --- encoder: 4 x (stride-2 conv + sigmoid), fully VMEM-resident -----
        a = x_ref[...]                                  # (B*H, W*Cin) f32
        for li in range(n_layers):
            sel_ref, wb_ref, b_ref = layer_refs[3 * li: 3 * li + 3]
            acc = None
            for kh in range(_KSIZE):
                # gather the padded input rows 2*oh + kh of every image (MXU)
                rows = jnp.dot(sel_ref[kh], a,
                               preferred_element_type=jnp.float32)
                # banded weight matmul: folds the 3 kw taps, stride-2 column
                # subsampling and zero padding into a single dot
                term = jnp.dot(rows, wb_ref[kh],
                               preferred_element_type=jnp.float32)
                acc = term if acc is None else acc + term
            z = acc + b_ref[...]                         # (B*OH, OW*Cout)
            # sigmoid: reciprocal runs on the EUP slot
            a = pl.reciprocal(1.0 + jnp.exp(-z), approx=False)

        # --- flatten encoder output to per-sample feature vectors ------------
        # a has rows (b, oh) and columns (ow, c); gather sample rows with a
        # constant 0/1 matmul (no in-kernel slicing), concat oh-chunks along
        # the lane axis.  For oh_last == 1 this is a trivial identity dot.
        chunks = [jnp.dot(fsel_ref[oh], a, preferred_element_type=jnp.float32)
                  for oh in range(oh_last)]
        feat = chunks[0] if oh_last == 1 else jnp.concatenate(chunks, axis=1)

        # --- prototype layer: squared Euclidean distances ---------------------
        # protos passed pre-transposed (D, P), squared norms precomputed (1, P)
        xp = jnp.dot(feat, pt_ref[...],
                     preferred_element_type=jnp.float32)      # (B, P)
        ff = jnp.sum(feat * feat, axis=-1, keepdims=True)     # (B, 1)
        dist = ff + pp_ref[...] - 2.0 * xp                    # (B, P)

        # --- dense layer + softmax --------------------------------------------
        logits = jnp.dot(dist, fcw_ref[...],
                         preferred_element_type=jnp.float32) + fcb_ref[...]
        m = jnp.max(logits, axis=-1, keepdims=True)
        e = jnp.exp(logits - m)
        denom = jnp.sum(e, axis=-1, keepdims=True)
        o_ref[...] = e * pl.reciprocal(denom, approx=True)

    return kernel


def _full_spec(shape):
    nd = len(shape)
    return pl.BlockSpec(shape, lambda i: (0,) * nd)


@jax.jit
def cae_forward(x_nchw, prep):
    B, Cin, H, W = x_nchw.shape
    # single host-side layout transform: NCHW -> dense 2-D (B*H, W*Cin)
    x2d = jnp.transpose(x_nchw.astype(jnp.float32),
                        (0, 2, 3, 1)).reshape(B * H, W * Cin)

    oh = H
    for _ in range(_N_CONV):
        oh = _conv_out(oh)

    layer_arrays = []
    for sel, wband, brow in prep["layers"]:
        layer_arrays += [sel, wband, brow]

    inputs = [x2d] + layer_arrays + [prep["fsel"], prep["protos_t"],
                                     prep["pp"], prep["fc_w"], prep["fc_b"]]
    n_classes = prep["fc_b"].shape[1]

    kernel = _make_kernel(_N_CONV, oh)
    return pl.pallas_call(
        kernel,
        out_shape=jax.ShapeDtypeStruct((B, n_classes), jnp.float32),
        grid=(1,),
        in_specs=[_full_spec(a.shape) for a in inputs],
        out_specs=_full_spec((B, n_classes)),
        compiler_params=pltpu.CompilerParams(
            dimension_semantics=("arbitrary",)),
    )(*inputs)


# ----------------------------------------------------------------------------
# One-time host-side parameter preprocessing
# ----------------------------------------------------------------------------
def prepare_params(params, batch, in_ch, height, width):
    layers = []
    h, w, cin = height, width, in_ch
    for wt, bias in params["convs"]:
        wt = np.asarray(wt, np.float32)        # (Cout, Cin, 3, 3)
        bias = np.asarray(bias, np.float32)    # (Cout,)
        cout = wt.shape[0]
        oh, ow = _conv_out(h), _conv_out(w)

        # Row-selection matrices: pick padded input row 2*oh + kh of each image;
        # out-of-range rows are the zero padding -> all-zero selector row.
        sel = np.zeros((_KSIZE, batch * oh, batch * h), np.float32)
        for kh in range(_KSIZE):
            for b in range(batch):
                for o in range(oh):
                    hh = _STRIDE * o + kh - _PAD
                    if 0 <= hh < h:
                        sel[kh, b * oh + o, b * h + hh] = 1.0

        # Banded weight matrices: fold kw taps, stride-2 column subsampling and
        # zero padding into a (W*Cin, OW*Cout) matrix per kh.
        wband = np.zeros((_KSIZE, w * cin, ow * cout), np.float32)
        for kh in range(_KSIZE):
            for o in range(ow):
                for kw in range(_KSIZE):
                    ww = _STRIDE * o + kw - _PAD
                    if 0 <= ww < w:
                        wband[kh, ww * cin:(ww + 1) * cin,
                              o * cout:(o + 1) * cout] = wt[:, :, kh, kw].T

        brow = np.tile(bias[None, :], (1, ow)).astype(np.float32)  # (1, OW*Cout)
        layers.append((jnp.asarray(sel), jnp.asarray(wband), jnp.asarray(brow)))
        h, w, cin = oh, ow, cout

    oh_last, ow_last, n_z = h, w, cin

    # Flatten row-gather: fsel[oh, b, b*OH + oh] = 1 picks the (b, oh) row of
    # the last activation so flatten is a matmul instead of slicing/concat.
    fsel = np.zeros((oh_last, batch, batch * oh_last), np.float32)
    for o in range(oh_last):
        for b in range(batch):
            fsel[o, b, b * oh_last + o] = 1.0

    # Prototypes: permute feature dim from PyTorch NCHW-flatten order (c, oh, ow)
    # to the kernel's natural (oh, ow, c) order, pre-transpose to (D, P), and
    # precompute the squared norms once (they are parameters).
    protos = np.asarray(params["protos"], np.float32)       # (P, n_z*OH*OW)
    n_proto = protos.shape[0]
    pm = protos.reshape(n_proto, n_z, oh_last, ow_last)
    pm = pm.transpose(0, 2, 3, 1).reshape(n_proto, -1)      # (P, D)
    protos_t = jnp.asarray(pm.T.copy())                     # (D, P)
    pp = jnp.asarray(np.sum(pm * pm, axis=1, keepdims=True).T)  # (1, P)

    return dict(layers=layers, fsel=jnp.asarray(fsel), protos_t=protos_t,
                pp=pp,
                fc_w=jnp.asarray(np.asarray(params["fc_w"], np.float32)),
                fc_b=jnp.asarray(np.asarray(params["fc_b"], np.float32)))


# ----------------------------------------------------------------------------
# PyTorch-style parameter init (matches the module's layer structure)
# ----------------------------------------------------------------------------
def init_params(key, in_ch=1, filter_dim=32, n_z=10,
                n_prototype_vectors=10, n_classes=10, spatial=16):
    ks = jax.random.split(key, 11)
    chans = [in_ch, filter_dim, filter_dim, filter_dim, n_z]

    def conv_init(k, cout, cin):
        fan_in = cin * _KSIZE * _KSIZE
        bound = 1.0 / np.sqrt(fan_in)
        kw_, kb_ = jax.random.split(k)
        w = jax.random.uniform(kw_, (cout, cin, _KSIZE, _KSIZE), jnp.float32,
                               -bound, bound)
        b = jax.random.uniform(kb_, (cout,), jnp.float32, -bound, bound)
        return w, b

    convs = [conv_init(ks[i], chans[i + 1], chans[i]) for i in range(_N_CONV)]

    h = spatial
    for _ in range(_N_CONV):
        h = _conv_out(h)
    input_dim_prototype = n_z * h * h

    protos = jax.random.uniform(ks[8], (n_prototype_vectors,
                                        input_dim_prototype), jnp.float32)
    fb = 1.0 / np.sqrt(n_prototype_vectors)
    fc_w = jax.random.uniform(ks[9], (n_prototype_vectors, n_classes),
                              jnp.float32, -fb, fb)
    fc_b = jax.random.uniform(ks[10], (1, n_classes), jnp.float32, -fb, fb)
    return dict(convs=convs, protos=protos, fc_w=fc_w, fc_b=fc_b,
                input_dim_prototype=input_dim_prototype)


# ----------------------------------------------------------------------------
# Pure-JAX (XLA) reference of the same forward pass, for verification
# ----------------------------------------------------------------------------
def reference_forward(x_nchw, params):
    out = x_nchw.astype(jnp.float32)
    for w, b in params["convs"]:
        out = jax.lax.conv_general_dilated(
            out, w, window_strides=(_STRIDE, _STRIDE),
            padding=((_PAD, _PAD), (_PAD, _PAD)),
            dimension_numbers=("NCHW", "OIHW", "NCHW"))
        out = jax.nn.sigmoid(out + b[None, :, None, None])
    feat = out.reshape(out.shape[0], -1)                      # NCHW flatten
    protos = params["protos"]
    dist = jnp.sum((feat[:, None, :] - protos[None, :, :]) ** 2, axis=-1)
    logits = dist @ params["fc_w"] + params["fc_b"]
    return jax.nn.softmax(logits, axis=-1)


if __name__ == "__main__":
    B, Cin, H, W = 2, 1, 16, 16
    key = jax.random.PRNGKey(0)
    kx, kp = jax.random.split(key)
    x = jax.random.normal(kx, (B, Cin, H, W), jnp.float32)

    params = init_params(kp, in_ch=Cin, filter_dim=32, n_z=10,
                         n_prototype_vectors=10, n_classes=10, spatial=H)
    prep = prepare_params(params, batch=B, in_ch=Cin, height=H, width=W)

    probs = cae_forward(x, prep)
    probs = jax.block_until_ready(probs)

    ref = jax.block_until_ready(reference_forward(x, params))

    assert probs.shape == (B, 10)
    assert bool(jnp.all(jnp.isfinite(probs)))
    # Tolerances account for the approx (EUP) reciprocal in the softmax and
    # default TPU matmul precision in both implementations.
    assert bool(jnp.allclose(jnp.sum(probs, axis=-1), 1.0, atol=1e-2))
    assert bool(jnp.allclose(probs, ref, atol=1e-2, rtol=1e-2))
    print("KERNEL_OK")
</pallas_src>

<mosaic_0001>
module attributes {stable_mosaic.version = 11 : i64} {
  func.func @kernel(%arg0: i32, %arg1: memref<32x16xf32, #tpu.memory_space<vmem>>, %arg2: memref<3x16x32xf32, #tpu.memory_space<vmem>>, %arg3: memref<3x16x256xf32, #tpu.memory_space<vmem>>, %arg4: memref<1x256xf32, #tpu.memory_space<vmem>>, %arg5: memref<3x8x16xf32, #tpu.memory_space<vmem>>, %arg6: memref<3x256x128xf32, #tpu.memory_space<vmem>>, %arg7: memref<1x128xf32, #tpu.memory_space<vmem>>, %arg8: memref<3x4x8xf32, #tpu.memory_space<vmem>>, %arg9: memref<3x128x64xf32, #tpu.memory_space<vmem>>, %arg10: memref<1x64xf32, #tpu.memory_space<vmem>>, %arg11: memref<3x2x4xf32, #tpu.memory_space<vmem>>, %arg12: memref<3x64x10xf32, #tpu.memory_space<vmem>>, %arg13: memref<1x10xf32, #tpu.memory_space<vmem>>, %arg14: memref<1x2x2xf32, #tpu.memory_space<vmem>>, %arg15: memref<10x10xf32, #tpu.memory_space<vmem>>, %arg16: memref<1x10xf32, #tpu.memory_space<vmem>>, %arg17: memref<10x10xf32, #tpu.memory_space<vmem>>, %arg18: memref<1x10xf32, #tpu.memory_space<vmem>>, %arg19: memref<2x10xf32, #tpu.memory_space<vmem>>) attributes {dimension_semantics = [#tpu.dimension_semantics<arbitrary>], iteration_bounds = array<i64: 1>, scalar_prefetch = 0 : i64, scratch_operands = 0 : i64, tpu.core_type = #tpu.core_type<tc>, window_params = [{pipeline_mode = #tpu.pipeline_mode<synchronous>, transform_indices = @transform_0, window_bounds = array<i64: 32, 16>}, {pipeline_mode = #tpu.pipeline_mode<synchronous>, transform_indices = @transform_1, window_bounds = array<i64: 3, 16, 32>}, {pipeline_mode = #tpu.pipeline_mode<synchronous>, transform_indices = @transform_2, window_bounds = array<i64: 3, 16, 256>}, {pipeline_mode = #tpu.pipeline_mode<synchronous>, transform_indices = @transform_3, window_bounds = array<i64: 1, 256>}, {pipeline_mode = #tpu.pipeline_mode<synchronous>, transform_indices = @transform_4, window_bounds = array<i64: 3, 8, 16>}, {pipeline_mode = #tpu.pipeline_mode<synchronous>, transform_indices = @transform_5, window_bounds = array<i64: 3, 256, 128>}, {pipeline_mode = #tpu.pipeline_mode<synchronous>, transform_indices = @transform_6, window_bounds = array<i64: 1, 128>}, {pipeline_mode = #tpu.pipeline_mode<synchronous>, transform_indices = @transform_7, window_bounds = array<i64: 3, 4, 8>}, {pipeline_mode = #tpu.pipeline_mode<synchronous>, transform_indices = @transform_8, window_bounds = array<i64: 3, 128, 64>}, {pipeline_mode = #tpu.pipeline_mode<synchronous>, transform_indices = @transform_9, window_bounds = array<i64: 1, 64>}, {pipeline_mode = #tpu.pipeline_mode<synchronous>, transform_indices = @transform_10, window_bounds = array<i64: 3, 2, 4>}, {pipeline_mode = #tpu.pipeline_mode<synchronous>, transform_indices = @transform_11, window_bounds = array<i64: 3, 64, 10>}, {pipeline_mode = #tpu.pipeline_mode<synchronous>, transform_indices = @transform_12, window_bounds = array<i64: 1, 10>}, {pipeline_mode = #tpu.pipeline_mode<synchronous>, transform_indices = @transform_13, window_bounds = array<i64: 1, 2, 2>}, {pipeline_mode = #tpu.pipeline_mode<synchronous>, transform_indices = @transform_14, window_bounds = array<i64: 10, 10>}, {pipeline_mode = #tpu.pipeline_mode<synchronous>, transform_indices = @transform_15, window_bounds = array<i64: 1, 10>}, {pipeline_mode = #tpu.pipeline_mode<synchronous>, transform_indices = @transform_16, window_bounds = array<i64: 10, 10>}, {pipeline_mode = #tpu.pipeline_mode<synchronous>, transform_indices = @transform_17, window_bounds = array<i64: 1, 10>}, {pipeline_mode = #tpu.pipeline_mode<synchronous>, transform_indices = @transform_18, window_bounds = array<i64: 2, 10>}]} {
    %c0 = arith.constant 0 : index
    %c0_0 = arith.constant 0 : index
    %0 = vector.load %arg1[%c0, %c0_0] : memref<32x16xf32, #tpu.memory_space<vmem>>, vector<32x16xf32>
    %c0_1 = arith.constant 0 : index
    %c0_2 = arith.constant 0 : index
    %c0_3 = arith.constant 0 : index
    %1 = vector.load %arg2[%c0_1, %c0_2, %c0_3] : memref<3x16x32xf32, #tpu.memory_space<vmem>>, vector<1x16x32xf32>
    %2 = vector.shape_cast %1 : vector<1x16x32xf32> to vector<16x32xf32>
    %cst = arith.constant dense<0.000000e+00> : vector<16x16xf32>
    %3 = tpu.matmul %2, %0, %cst {dimension_numbers = #tpu.dot_dimension_numbers<[1], [0], [0], [1], [0, 0, 1, 1], [], []>} : vector<16x32xf32>, vector<32x16xf32>, vector<16x16xf32> -> vector<16x16xf32>
    %c0_4 = arith.constant 0 : index
    %c0_5 = arith.constant 0 : index
    %c0_6 = arith.constant 0 : index
    %4 = vector.load %arg3[%c0_4, %c0_5, %c0_6] : memref<3x16x256xf32, #tpu.memory_space<vmem>>, vector<1x16x256xf32>
    %5 = vector.shape_cast %4 : vector<1x16x256xf32> to vector<16x256xf32>
    %cst_7 = arith.constant dense<0.000000e+00> : vector<16x256xf32>
    %6 = tpu.matmul %3, %5, %cst_7 {dimension_numbers = #tpu.dot_dimension_numbers<[1], [0], [0], [1], [0, 0, 1, 1], [], []>} : vector<16x16xf32>, vector<16x256xf32>, vector<16x256xf32> -> vector<16x256xf32>
    %c1 = arith.constant 1 : index
    %c0_8 = arith.constant 0 : index
    %c0_9 = arith.constant 0 : index
    %7 = vector.load %arg2[%c1, %c0_8, %c0_9] : memref<3x16x32xf32, #tpu.memory_space<vmem>>, vector<1x16x32xf32>
    %8 = vector.shape_cast %7 : vector<1x16x32xf32> to vector<16x32xf32>
    %cst_10 = arith.constant dense<0.000000e+00> : vector<16x16xf32>
    %9 = tpu.matmul %8, %0, %cst_10 {dimension_numbers = #tpu.dot_dimension_numbers<[1], [0], [0], [1], [0, 0, 1, 1], [], []>} : vector<16x32xf32>, vector<32x16xf32>, vector<16x16xf32> -> vector<16x16xf32>
    %c1_11 = arith.constant 1 : index
    %c0_12 = arith.constant 0 : index
    %c0_13 = arith.constant 0 : index
    %10 = vector.load %arg3[%c1_11, %c0_12, %c0_13] : memref<3x16x256xf32, #tpu.memory_space<vmem>>, vector<1x16x256xf32>
    %11 = vector.shape_cast %10 : vector<1x16x256xf32> to vector<16x256xf32>
    %cst_14 = arith.constant dense<0.000000e+00> : vector<16x256xf32>
    %12 = tpu.matmul %9, %11, %cst_14 {dimension_numbers = #tpu.dot_dimension_numbers<[1], [0], [0], [1], [0, 0, 1, 1], [], []>} : vector<16x16xf32>, vector<16x256xf32>, vector<16x256xf32> -> vector<16x256xf32>
    %13 = arith.addf %6, %12 : vector<16x256xf32>
    %c2 = arith.constant 2 : index
    %c0_15 = arith.constant 0 : index
    %c0_16 = arith.constant 0 : index
    %14 = vector.load %arg2[%c2, %c0_15, %c0_16] : memref<3x16x32xf32, #tpu.memory_space<vmem>>, vector<1x16x32xf32>
    %15 = vector.shape_cast %14 : vector<1x16x32xf32> to vector<16x32xf32>
    %cst_17 = arith.constant dense<0.000000e+00> : vector<16x16xf32>
    %16 = tpu.matmul %15, %0, %cst_17 {dimension_numbers = #tpu.dot_dimension_numbers<[1], [0], [0], [1], [0, 0, 1, 1], [], []>} : vector<16x32xf32>, vector<32x16xf32>, vector<16x16xf32> -> vector<16x16xf32>
    %c2_18 = arith.constant 2 : index
    %c0_19 = arith.constant 0 : index
    %c0_20 = arith.constant 0 : index
    %17 = vector.load %arg3[%c2_18, %c0_19, %c0_20] : memref<3x16x256xf32, #tpu.memory_space<vmem>>, vector<1x16x256xf32>
    %18 = vector.shape_cast %17 : vector<1x16x256xf32> to vector<16x256xf32>
    %cst_21 = arith.constant dense<0.000000e+00> : vector<16x256xf32>
    %19 = tpu.matmul %16, %18, %cst_21 {dimension_numbers = #tpu.dot_dimension_numbers<[1], [0], [0], [1], [0, 0, 1, 1], [], []>} : vector<16x16xf32>, vector<16x256xf32>, vector<16x256xf32> -> vector<16x256xf32>
    %20 = arith.addf %13, %19 : vector<16x256xf32>
    %c0_22 = arith.constant 0 : index
    %c0_23 = arith.constant 0 : index
    %21 = vector.load %arg4[%c0_22, %c0_23] : memref<1x256xf32, #tpu.memory_space<vmem>>, vector<1x256xf32>
    %22 = vector.broadcast %21 : vector<1x256xf32> to vector<16x256xf32>
    %23 = arith.addf %20, %22 : vector<16x256xf32>
    %cst_24 = arith.constant 0.000000e+00 : f32
    %24 = vector.broadcast %cst_24 : f32 to vector<16x256xf32>
    %25 = arith.subf %24, %23 : vector<16x256xf32>
    %26 = math.exp %25 : vector<16x256xf32>
    %cst_25 = arith.constant 1.000000e+00 : f32
    %27 = vector.broadcast %cst_25 : f32 to vector<16x256xf32>
    %28 = arith.addf %27, %26 : vector<16x256xf32>
    %29 = tpu.reciprocal %28 : vector<16x256xf32> -> vector<16x256xf32>
    %c0_26 = arith.constant 0 : index
    %c0_27 = arith.constant 0 : index
    %c0_28 = arith.constant 0 : index
    %30 = vector.load %arg5[%c0_26, %c0_27, %c0_28] : memref<3x8x16xf32, #tpu.memory_space<vmem>>, vector<1x8x16xf32>
    %31 = vector.shape_cast %30 : vector<1x8x16xf32> to vector<8x16xf32>
    %cst_29 = arith.constant dense<0.000000e+00> : vector<8x256xf32>
    %32 = tpu.matmul %31, %29, %cst_29 {dimension_numbers = #tpu.dot_dimension_numbers<[1], [0], [0], [1], [0, 0, 1, 1], [], []>} : vector<8x16xf32>, vector<16x256xf32>, vector<8x256xf32> -> vector<8x256xf32>
    %c0_30 = arith.constant 0 : index
    %c0_31 = arith.constant 0 : index
    %c0_32 = arith.constant 0 : index
    %33 = vector.load %arg6[%c0_30, %c0_31, %c0_32] : memref<3x256x128xf32, #tpu.memory_space<vmem>>, vector<1x256x128xf32>
    %34 = vector.shape_cast %33 : vector<1x256x128xf32> to vector<256x128xf32>
    %cst_33 = arith.constant dense<0.000000e+00> : vector<8x128xf32>
    %35 = tpu.matmul %32, %34, %cst_33 {dimension_numbers = #tpu.dot_dimension_numbers<[1], [0], [0], [1], [0, 0, 1, 1], [], []>} : vector<8x256xf32>, vector<256x128xf32>, vector<8x128xf32> -> vector<8x128xf32>
    %c1_34 = arith.constant 1 : index
    %c0_35 = arith.constant 0 : index
    %c0_36 = arith.constant 0 : index
    %36 = vector.load %arg5[%c1_34, %c0_35, %c0_36] : memref<3x8x16xf32, #tpu.memory_space<vmem>>, vector<1x8x16xf32>
    %37 = vector.shape_cast %36 : vector<1x8x16xf32> to vector<8x16xf32>
    %cst_37 = arith.constant dense<0.000000e+00> : vector<8x256xf32>
    %38 = tpu.matmul %37, %29, %cst_37 {dimension_numbers = #tpu.dot_dimension_numbers<[1], [0], [0], [1], [0, 0, 1, 1], [], []>} : vector<8x16xf32>, vector<16x256xf32>, vector<8x256xf32> -> vector<8x256xf32>
    %c1_38 = arith.constant 1 : index
    %c0_39 = arith.constant 0 : index
    %c0_40 = arith.constant 0 : index
    %39 = vector.load %arg6[%c1_38, %c0_39, %c0_40] : memref<3x256x128xf32, #tpu.memory_space<vmem>>, vector<1x256x128xf32>
    %40 = vector.shape_cast %39 : vector<1x256x128xf32> to vector<256x128xf32>
    %cst_41 = arith.constant dense<0.000000e+00> : vector<8x128xf32>
    %41 = tpu.matmul %38, %40, %cst_41 {dimension_numbers = #tpu.dot_dimension_numbers<[1], [0], [0], [1], [0, 0, 1, 1], [], []>} : vector<8x256xf32>, vector<256x128xf32>, vector<8x128xf32> -> vector<8x128xf32>
    %42 = arith.addf %35, %41 : vector<8x128xf32>
    %c2_42 = arith.constant 2 : index
    %c0_43 = arith.constant 0 : index
    %c0_44 = arith.constant 0 : index
    %43 = vector.load %arg5[%c2_42, %c0_43, %c0_44] : memref<3x8x16xf32, #tpu.memory_space<vmem>>, vector<1x8x16xf32>
    %44 = vector.shape_cast %43 : vector<1x8x16xf32> to vector<8x16xf32>
    %cst_45 = arith.constant dense<0.000000e+00> : vector<8x256xf32>
    %45 = tpu.matmul %44, %29, %cst_45 {dimension_numbers = #tpu.dot_dimension_numbers<[1], [0], [0], [1], [0, 0, 1, 1], [], []>} : vector<8x16xf32>, vector<16x256xf32>, vector<8x256xf32> -> vector<8x256xf32>
    %c2_46 = arith.constant 2 : index
    %c0_47 = arith.constant 0 : index
    %c0_48 = arith.constant 0 : index
    %46 = vector.load %arg6[%c2_46, %c0_47, %c0_48] : memref<3x256x128xf32, #tpu.memory_space<vmem>>, vector<1x256x128xf32>
    %47 = vector.shape_cast %46 : vector<1x256x128xf32> to vector<256x128xf32>
    %cst_49 = arith.constant dense<0.000000e+00> : vector<8x128xf32>
    %48 = tpu.matmul %45, %47, %cst_49 {dimension_numbers = #tpu.dot_dimension_numbers<[1], [0], [0], [1], [0, 0, 1, 1], [], []>} : vector<8x256xf32>, vector<256x128xf32>, vector<8x128xf32> -> vector<8x128xf32>
    %49 = arith.addf %42, %48 : vector<8x128xf32>
    %c0_50 = arith.constant 0 : index
    %c0_51 = arith.constant 0 : index
    %50 = vector.load %arg7[%c0_50, %c0_51] : memref<1x128xf32, #tpu.memory_space<vmem>>, vector<1x128xf32>
    %51 = vector.broadcast %50 : vector<1x128xf32> to vector<8x128xf32>
    %52 = arith.addf %49, %51 : vector<8x128xf32>
    %cst_52 = arith.constant 0.000000e+00 : f32
    %53 = vector.broadcast %cst_52 : f32 to vector<8x128xf32>
    %54 = arith.subf %53, %52 : vector<8x128xf32>
    %55 = math.exp %54 : vector<8x128xf32>
    %cst_53 = arith.constant 1.000000e+00 : f32
    %56 = vector.broadcast %cst_53 : f32 to vector<8x128xf32>
    %57 = arith.addf %56, %55 : vector<8x128xf32>
    %58 = tpu.reciprocal %57 : vector<8x128xf32> -> vector<8x128xf32>
    %c0_54 = arith.constant 0 : index
    %c0_55 = arith.constant 0 : index
    %c0_56 = arith.constant 0 : index
    %59 = vector.load %arg8[%c0_54, %c0_55, %c0_56] : memref<3x4x8xf32, #tpu.memory_space<vmem>>, vector<1x4x8xf32>
    %60 = vector.shape_cast %59 : vector<1x4x8xf32> to vector<4x8xf32>
    %cst_57 = arith.constant dense<0.000000e+00> : vector<4x128xf32>
    %61 = tpu.matmul %60, %58, %cst_57 {dimension_numbers = #tpu.dot_dimension_numbers<[1], [0], [0], [1], [0, 0, 1, 1], [], []>} : vector<4x8xf32>, vector<8x128xf32>, vector<4x128xf32> -> vector<4x128xf32>
    %c0_58 = arith.constant 0 : index
    %c0_59 = arith.constant 0 : index
    %c0_60 = arith.constant 0 : index
    %62 = vector.load %arg9[%c0_58, %c0_59, %c0_60] : memref<3x128x64xf32, #tpu.memory_space<vmem>>, vector<1x128x64xf32>
    %63 = vector.shape_cast %62 : vector<1x128x64xf32> to vector<128x64xf32>
    %cst_61 = arith.constant dense<0.000000e+00> : vector<4x64xf32>
    %64 = tpu.matmul %61, %63, %cst_61 {dimension_numbers = #tpu.dot_dimension_numbers<[1], [0], [0], [1], [0, 0, 1, 1], [], []>} : vector<4x128xf32>, vector<128x64xf32>, vector<4x64xf32> -> vector<4x64xf32>
    %c1_62 = arith.constant 1 : index
    %c0_63 = arith.constant 0 : index
    %c0_64 = arith.constant 0 : index
    %65 = vector.load %arg8[%c1_62, %c0_63, %c0_64] : memref<3x4x8xf32, #tpu.memory_space<vmem>>, vector<1x4x8xf32>
    %66 = vector.shape_cast %65 : vector<1x4x8xf32> to vector<4x8xf32>
    %cst_65 = arith.constant dense<0.000000e+00> : vector<4x128xf32>
    %67 = tpu.matmul %66, %58, %cst_65 {dimension_numbers = #tpu.dot_dimension_numbers<[1], [0], [0], [1], [0, 0, 1, 1], [], []>} : vector<4x8xf32>, vector<8x128xf32>, vector<4x128xf32> -> vector<4x128xf32>
    %c1_66 = arith.constant 1 : index
    %c0_67 = arith.constant 0 : index
    %c0_68 = arith.constant 0 : index
    %68 = vector.load %arg9[%c1_66, %c0_67, %c0_68] : memref<3x128x64xf32, #tpu.memory_space<vmem>>, vector<1x128x64xf32>
    %69 = vector.shape_cast %68 : vector<1x128x64xf32> to vector<128x64xf32>
    %cst_69 = arith.constant dense<0.000000e+00> : vector<4x64xf32>
    %70 = tpu.matmul %67, %69, %cst_69 {dimension_numbers = #tpu.dot_dimension_numbers<[1], [0], [0], [1], [0, 0, 1, 1], [], []>} : vector<4x128xf32>, vector<128x64xf32>, vector<4x64xf32> -> vector<4x64xf32>
    %71 = arith.addf %64, %70 : vector<4x64xf32>
    %c2_70 = arith.constant 2 : index
    %c0_71 = arith.constant 0 : index
    %c0_72 = arith.constant 0 : index
    %72 = vector.load %arg8[%c2_70, %c0_71, %c0_72] : memref<3x4x8xf32, #tpu.memory_space<vmem>>, vector<1x4x8xf32>
    %73 = vector.shape_cast %72 : vector<1x4x8xf32> to vector<4x8xf32>
    %cst_73 = arith.constant dense<0.000000e+00> : vector<4x128xf32>
    %74 = tpu.matmul %73, %58, %cst_73 {dimension_numbers = #tpu.dot_dimension_numbers<[1], [0], [0], [1], [0, 0, 1, 1], [], []>} : vector<4x8xf32>, vector<8x128xf32>, vector<4x128xf32> -> vector<4x128xf32>
    %c2_74 = arith.constant 2 : index
    %c0_75 = arith.constant 0 : index
    %c0_76 = arith.constant 0 : index
    %75 = vector.load %arg9[%c2_74, %c0_75, %c0_76] : memref<3x128x64xf32, #tpu.memory_space<vmem>>, vector<1x128x64xf32>
    %76 = vector.shape_cast %75 : vector<1x128x64xf32> to vector<128x64xf32>
    %cst_77 = arith.constant dense<0.000000e+00> : vector<4x64xf32>
    %77 = tpu.matmul %74, %76, %cst_77 {dimension_numbers = #tpu.dot_dimension_numbers<[1], [0], [0], [1], [0, 0, 1, 1], [], []>} : vector<4x128xf32>, vector<128x64xf32>, vector<4x64xf32> -> vector<4x64xf32>
    %78 = arith.addf %71, %77 : vector<4x64xf32>
    %c0_78 = arith.constant 0 : index
    %c0_79 = arith.constant 0 : index
    %79 = vector.load %arg10[%c0_78, %c0_79] : memref<1x64xf32, #tpu.memory_space<vmem>>, vector<1x64xf32>
    %80 = vector.broadcast %79 : vector<1x64xf32> to vector<4x64xf32>
    %81 = arith.addf %78, %80 : vector<4x64xf32>
    %cst_80 = arith.constant 0.000000e+00 : f32
    %82 = vector.broadcast %cst_80 : f32 to vector<4x64xf32>
    %83 = arith.subf %82, %81 : vector<4x64xf32>
    %84 = math.exp %83 : vector<4x64xf32>
    %cst_81 = arith.constant 1.000000e+00 : f32
    %85 = vector.broadcast %cst_81 : f32 to vector<4x64xf32>
    %86 = arith.addf %85, %84 : vector<4x64xf32>
    %87 = tpu.reciprocal %86 : vector<4x64xf32> -> vector<4x64xf32>
    %c0_82 = arith.constant 0 : index
    %c0_83 = arith.constant 0 : index
    %c0_84 = arith.constant 0 : index
    %88 = vector.load %arg11[%c0_82, %c0_83, %c0_84] : memref<3x2x4xf32, #tpu.memory_space<vmem>>, vector<1x2x4xf32>
    %89 = vector.shape_cast %88 : vector<1x2x4xf32> to vector<2x4xf32>
    %cst_85 = arith.constant dense<0.000000e+00> : vector<2x64xf32>
    %90 = tpu.matmul %89, %87, %cst_85 {dimension_numbers = #tpu.dot_dimension_numbers<[1], [0], [0], [1], [0, 0, 1, 1], [], []>} : vector<2x4xf32>, vector<4x64xf32>, vector<2x64xf32> -> vector<2x64xf32>
    %c0_86 = arith.constant 0 : index
    %c0_87 = arith.constant 0 : index
    %c0_88 = arith.constant 0 : index
    %91 = vector.load %arg12[%c0_86, %c0_87, %c0_88] : memref<3x64x10xf32, #tpu.memory_space<vmem>>, vector<1x64x10xf32>
    %92 = vector.shape_cast %91 : vector<1x64x10xf32> to vector<64x10xf32>
    %cst_89 = arith.constant dense<0.000000e+00> : vector<2x10xf32>
    %93 = tpu.matmul %90, %92, %cst_89 {dimension_numbers = #tpu.dot_dimension_numbers<[1], [0], [0], [1], [0, 0, 1, 1], [], []>} : vector<2x64xf32>, vector<64x10xf32>, vector<2x10xf32> -> vector<2x10xf32>
    %c1_90 = arith.constant 1 : index
    %c0_91 = arith.constant 0 : index
    %c0_92 = arith.constant 0 : index
    %94 = vector.load %arg11[%c1_90, %c0_91, %c0_92] : memref<3x2x4xf32, #tpu.memory_space<vmem>>, vector<1x2x4xf32>
    %95 = vector.shape_cast %94 : vector<1x2x4xf32> to vector<2x4xf32>
    %cst_93 = arith.constant dense<0.000000e+00> : vector<2x64xf32>
    %96 = tpu.matmul %95, %87, %cst_93 {dimension_numbers = #tpu.dot_dimension_numbers<[1], [0], [0], [1], [0, 0, 1, 1], [], []>} : vector<2x4xf32>, vector<4x64xf32>, vector<2x64xf32> -> vector<2x64xf32>
    %c1_94 = arith.constant 1 : index
    %c0_95 = arith.constant 0 : index
    %c0_96 = arith.constant 0 : index
    %97 = vector.load %arg12[%c1_94, %c0_95, %c0_96] : memref<3x64x10xf32, #tpu.memory_space<vmem>>, vector<1x64x10xf32>
    %98 = vector.shape_cast %97 : vector<1x64x10xf32> to vector<64x10xf32>
    %cst_97 = arith.constant dense<0.000000e+00> : vector<2x10xf32>
    %99 = tpu.matmul %96, %98, %cst_97 {dimension_numbers = #tpu.dot_dimension_numbers<[1], [0], [0], [1], [0, 0, 1, 1], [], []>} : vector<2x64xf32>, vector<64x10xf32>, vector<2x10xf32> -> vector<2x10xf32>
    %100 = arith.addf %93, %99 : vector<2x10xf32>
    %c2_98 = arith.constant 2 : index
    %c0_99 = arith.constant 0 : index
    %c0_100 = arith.constant 0 : index
    %101 = vector.load %arg11[%c2_98, %c0_99, %c0_100] : memref<3x2x4xf32, #tpu.memory_space<vmem>>, vector<1x2x4xf32>
    %102 = vector.shape_cast %101 : vector<1x2x4xf32> to vector<2x4xf32>
    %cst_101 = arith.constant dense<0.000000e+00> : vector<2x64xf32>
    %103 = tpu.matmul %102, %87, %cst_101 {dimension_numbers = #tpu.dot_dimension_numbers<[1], [0], [0], [1], [0, 0, 1, 1], [], []>} : vector<2x4xf32>, vector<4x64xf32>, vector<2x64xf32> -> vector<2x64xf32>
    %c2_102 = arith.constant 2 : index
    %c0_103 = arith.constant 0 : index
    %c0_104 = arith.constant 0 : index
    %104 = vector.load %arg12[%c2_102, %c0_103, %c0_104] : memref<3x64x10xf32, #tpu.memory_space<vmem>>, vector<1x64x10xf32>
    %105 = vector.shape_cast %104 : vector<1x64x10xf32> to vector<64x10xf32>
    %cst_105 = arith.constant dense<0.000000e+00> : vector<2x10xf32>
    %106 = tpu.matmul %103, %105, %cst_105 {dimension_numbers = #tpu.dot_dimension_numbers<[1], [0], [0], [1], [0, 0, 1, 1], [], []>} : vector<2x64xf32>, vector<64x10xf32>, vector<2x10xf32> -> vector<2x10xf32>
    %107 = arith.addf %100, %106 : vector<2x10xf32>
    %c0_106 = arith.constant 0 : index
    %c0_107 = arith.constant 0 : index
    %108 = vector.load %arg13[%c0_106, %c0_107] : memref<1x10xf32, #tpu.memory_space<vmem>>, vector<1x10xf32>
    %109 = vector.broadcast %108 : vector<1x10xf32> to vector<2x10xf32>
    %110 = arith.addf %107, %109 : vector<2x10xf32>
    %cst_108 = arith.constant 0.000000e+00 : f32
    %111 = vector.broadcast %cst_108 : f32 to vector<2x10xf32>
    %112 = arith.subf %111, %110 : vector<2x10xf32>
    %113 = math.exp %112 : vector<2x10xf32>
    %cst_109 = arith.constant 1.000000e+00 : f32
    %114 = vector.broadcast %cst_109 : f32 to vector<2x10xf32>
    %115 = arith.addf %114, %113 : vector<2x10xf32>
    %116 = tpu.reciprocal %115 : vector<2x10xf32> -> vector<2x10xf32>
    %c0_110 = arith.constant 0 : index
    %c0_111 = arith.constant 0 : index
    %c0_112 = arith.constant 0 : index
    %117 = vector.load %arg14[%c0_110, %c0_111, %c0_112] : memref<1x2x2xf32, #tpu.memory_space<vmem>>, vector<1x2x2xf32>
    %118 = vector.shape_cast %117 : vector<1x2x2xf32> to vector<2x2xf32>
    %cst_113 = arith.constant dense<0.000000e+00> : vector<2x10xf32>
    %119 = tpu.matmul %118, %116, %cst_113 {dimension_numbers = #tpu.dot_dimension_numbers<[1], [0], [0], [1], [0, 0, 1, 1], [], []>} : vector<2x2xf32>, vector<2x10xf32>, vector<2x10xf32> -> vector<2x10xf32>
    %c0_114 = arith.constant 0 : index
    %c0_115 = arith.constant 0 : index
    %120 = vector.load %arg15[%c0_114, %c0_115] : memref<10x10xf32, #tpu.memory_space<vmem>>, vector<10x10xf32>
    %cst_116 = arith.constant dense<0.000000e+00> : vector<2x10xf32>
    %121 = tpu.matmul %119, %120, %cst_116 {dimension_numbers = #tpu.dot_dimension_numbers<[1], [0], [0], [1], [0, 0, 1, 1], [], []>} : vector<2x10xf32>, vector<10x10xf32>, vector<2x10xf32> -> vector<2x10xf32>
    %122 = arith.mulf %119, %119 : vector<2x10xf32>
    %cst_117 = arith.constant dense<0.000000e+00> : vector<2xf32>
    %123 = vector.multi_reduction <add>, %122, %cst_117 [1] : vector<2x10xf32> to vector<2xf32>
    %124 = vector.shape_cast %123 : vector<2xf32> to vector<2x1xf32>
    %c0_118 = arith.constant 0 : index
    %c0_119 = arith.constant 0 : index
    %125 = vector.load %arg16[%c0_118, %c0_119] : memref<1x10xf32, #tpu.memory_space<vmem>>, vector<1x10xf32>
    %126 = vector.broadcast %124 : vector<2x1xf32> to vector<2x10xf32>
    %127 = vector.broadcast %125 : vector<1x10xf32> to vector<2x10xf32>
    %128 = arith.addf %126, %127 : vector<2x10xf32>
    %cst_120 = arith.constant 2.000000e+00 : f32
    %129 = vector.broadcast %cst_120 : f32 to vector<2x10xf32>
    %130 = arith.mulf %129, %121 : vector<2x10xf32>
    %131 = arith.subf %128, %130 : vector<2x10xf32>
    %c0_121 = arith.constant 0 : index
    %c0_122 = arith.constant 0 : index
    %132 = vector.load %arg17[%c0_121, %c0_122] : memref<10x10xf32, #tpu.memory_space<vmem>>, vector<10x10xf32>
    %cst_123 = arith.constant dense<0.000000e+00> : vector<2x10xf32>
    %133 = tpu.matmul %131, %132, %cst_123 {dimension_numbers = #tpu.dot_dimension_numbers<[1], [0], [0], [1], [0, 0, 1, 1], [], []>} : vector<2x10xf32>, vector<10x10xf32>, vector<2x10xf32> -> vector<2x10xf32>
    %c0_124 = arith.constant 0 : index
    %c0_125 = arith.constant 0 : index
    %134 = vector.load %arg18[%c0_124, %c0_125] : memref<1x10xf32, #tpu.memory_space<vmem>>, vector<1x10xf32>
    %135 = vector.broadcast %134 : vector<1x10xf32> to vector<2x10xf32>
    %136 = arith.addf %133, %135 : vector<2x10xf32>
    %cst_126 = arith.constant dense<0xFF800000> : vector<2xf32>
    %137 = vector.multi_reduction <maximumf>, %136, %cst_126 [1] : vector<2x10xf32> to vector<2xf32>
    %138 = vector.shape_cast %137 : vector<2xf32> to vector<2x1xf32>
    %139 = vector.broadcast %138 : vector<2x1xf32> to vector<2x10xf32>
    %140 = arith.subf %136, %139 : vector<2x10xf32>
    %141 = math.exp %140 : vector<2x10xf32>
    %cst_127 = arith.constant dense<0.000000e+00> : vector<2xf32>
    %142 = vector.multi_reduction <add>, %141, %cst_127 [1] : vector<2x10xf32> to vector<2xf32>
    %143 = vector.shape_cast %142 : vector<2xf32> to vector<2x1xf32>
    %144 = tpu.reciprocal %143 {approx = true} : vector<2x1xf32> -> vector<2x1xf32>
    %145 = vector.broadcast %144 : vector<2x1xf32> to vector<2x10xf32>
    %146 = arith.mulf %141, %145 : vector<2x10xf32>
    %c0_128 = arith.constant 0 : index
    %c0_129 = arith.constant 0 : index
    %147 = vector.load %arg19[%c0_128, %c0_129] : memref<2x10xf32, #tpu.memory_space<vmem>>, vector<2x10xf32>
    tpu.vector_store %arg19[%c0_128, %c0_129], %146 {strides = array<i32>} : memref<2x10xf32, #tpu.memory_space<vmem>>, vector<2x10xf32>,
    return
  }
  func.func @transform_0(%arg0: i32) -> (i32, i32) {
    %c0_i32 = arith.constant 0 : i32
    %c0_i32_0 = arith.constant 0 : i32
    %c0_i32_1 = arith.constant 0 : i32
    return %c0_i32, %c0_i32_0 : i32, i32
  }
  func.func @transform_1(%arg0: i32) -> (i32, i32, i32) {
    %c0_i32 = arith.constant 0 : i32
    %c0_i32_0 = arith.constant 0 : i32
    %c0_i32_1 = arith.constant 0 : i32
    %c0_i32_2 = arith.constant 0 : i32
    return %c0_i32, %c0_i32_0, %c0_i32_1 : i32, i32, i32
  }
  func.func @transform_2(%arg0: i32) -> (i32, i32, i32) {
    %c0_i32 = arith.constant 0 : i32
    %c0_i32_0 = arith.constant 0 : i32
    %c0_i32_1 = arith.constant 0 : i32
    %c0_i32_2 = arith.constant 0 : i32
    return %c0_i32, %c0_i32_0, %c0_i32_1 : i32, i32, i32
  }
  func.func @transform_3(%arg0: i32) -> (i32, i32) {
    %c0_i32 = arith.constant 0 : i32
    %c0_i32_0 = arith.constant 0 : i32
    %c0_i32_1 = arith.constant 0 : i32
    return %c0_i32, %c0_i32_0 : i32, i32
  }
  func.func @transform_4(%arg0: i32) -> (i32, i32, i32) {
    %c0_i32 = arith.constant 0 : i32
    %c0_i32_0 = arith.constant 0 : i32
    %c0_i32_1 = arith.constant 0 : i32
    %c0_i32_2 = arith.constant 0 : i32
    return %c0_i32, %c0_i32_0, %c0_i32_1 : i32, i32, i32
  }
  func.func @transform_5(%arg0: i32) -> (i32, i32, i32) {
    %c0_i32 = arith.constant 0 : i32
    %c0_i32_0 = arith.constant 0 : i32
    %c0_i32_1 = arith.constant 0 : i32
    %c0_i32_2 = arith.constant 0 : i32
    return %c0_i32, %c0_i32_0, %c0_i32_1 : i32, i32, i32
  }
  func.func @transform_6(%arg0: i32) -> (i32, i32) {
    %c0_i32 = arith.constant 0 : i32
    %c0_i32_0 = arith.constant 0 : i32
    %c0_i32_1 = arith.constant 0 : i32
    return %c0_i32, %c0_i32_0 : i32, i32
  }
  func.func @transform_7(%arg0: i32) -> (i32, i32, i32) {
    %c0_i32 = arith.constant 0 : i32
    %c0_i32_0 = arith.constant 0 : i32
    %c0_i32_1 = arith.constant 0 : i32
    %c0_i32_2 = arith.constant 0 : i32
    return %c0_i32, %c0_i32_0, %c0_i32_1 : i32, i32, i32
  }
  func.func @transform_8(%arg0: i32) -> (i32, i32, i32) {
    %c0_i32 = arith.constant 0 : i32
    %c0_i32_0 = arith.constant 0 : i32
    %c0_i32_1 = arith.constant 0 : i32
    %c0_i32_2 = arith.constant 0 : i32
    return %c0_i32, %c0_i32_0, %c0_i32_1 : i32, i32, i32
  }
  func.func @transform_9(%arg0: i32) -> (i32, i32) {
    %c0_i32 = arith.constant 0 : i32
    %c0_i32_0 = arith.constant 0 : i32
    %c0_i32_1 = arith.constant 0 : i32
    return %c0_i32, %c0_i32_0 : i32, i32
  }
  func.func @transform_10(%arg0: i32) -> (i32, i32, i32) {
    %c0_i32 = arith.constant 0 : i32
    %c0_i32_0 = arith.constant 0 : i32
    %c0_i32_1 = arith.constant 0 : i32
    %c0_i32_2 = arith.constant 0 : i32
    return %c0_i32, %c0_i32_0, %c0_i32_1 : i32, i32, i32
  }
  func.func @transform_11(%arg0: i32) -> (i32, i32, i32) {
    %c0_i32 = arith.constant 0 : i32
    %c0_i32_0 = arith.constant 0 : i32
    %c0_i32_1 = arith.constant 0 : i32
    %c0_i32_2 = arith.constant 0 : i32
    return %c0_i32, %c0_i32_0, %c0_i32_1 : i32, i32, i32
  }
  func.func @transform_12(%arg0: i32) -> (i32, i32) {
    %c0_i32 = arith.constant 0 : i32
    %c0_i32_0 = arith.constant 0 : i32
    %c0_i32_1 = arith.constant 0 : i32
    return %c0_i32, %c0_i32_0 : i32, i32
  }
  func.func @transform_13(%arg0: i32) -> (i32, i32, i32) {
    %c0_i32 = arith.constant 0 : i32
    %c0_i32_0 = arith.constant 0 : i32
    %c0_i32_1 = arith.constant 0 : i32
    %c0_i32_2 = arith.constant 0 : i32
    return %c0_i32, %c0_i32_0, %c0_i32_1 : i32, i32, i32
  }
  func.func @transform_14(%arg0: i32) -> (i32, i32) {
    %c0_i32 = arith.constant 0 : i32
    %c0_i32_0 = arith.constant 0 : i32
    %c0_i32_1 = arith.constant 0 : i32
    return %c0_i32, %c0_i32_0 : i32, i32
  }
  func.func @transform_15(%arg0: i32) -> (i32, i32) {
    %c0_i32 = arith.constant 0 : i32
    %c0_i32_0 = arith.constant 0 : i32
    %c0_i32_1 = arith.constant 0 : i32
    return %c0_i32, %c0_i32_0 : i32, i32
  }
  func.func @transform_16(%arg0: i32) -> (i32, i32) {
    %c0_i32 = arith.constant 0 : i32
    %c0_i32_0 = arith.constant 0 : i32
    %c0_i32_1 = arith.constant 0 : i32
    return %c0_i32, %c0_i32_0 : i32, i32
  }
  func.func @transform_17(%arg0: i32) -> (i32, i32) {
    %c0_i32 = arith.constant 0 : i32
    %c0_i32_0 = arith.constant 0 : i32
    %c0_i32_1 = arith.constant 0 : i32
    return %c0_i32, %c0_i32_0 : i32, i32
  }
  func.func @transform_18(%arg0: i32) -> (i32, i32) {
    %c0_i32 = arith.constant 0 : i32
    %c0_i32_0 = arith.constant 0 : i32
    %c0_i32_1 = arith.constant 0 : i32
    return %c0_i32, %c0_i32_0 : i32, i32
  }
}

</mosaic_0001>

<bundles_post_ra>
// kernel: cae_forward.1
= control target key start
LH: loop header
LB: loop body
LE: loop exit
PB: predicated region body
PF: predicated region fallthrough
CT: control target
= control target key end

     0   :  { %s4390_s0 = inlined_call_operand.hbm [shape: f32[32,16], index: 0, kind: input, shape index: {}]   ;;  %s4391_s1 = inlined_call_operand.vmem [shape: f32[3,16,32], index: 1, kind: input, shape index: {}]   ;;  %s4392_s2 = inlined_call_operand.hbm [shape: f32[3,16,256], index: 2, kind: input, shape index: {}]   ;;  %s4393_s3 = inlined_call_operand.vmem [shape: f32[1,256], index: 3, kind: input, shape index: {}]   ;;  %s4394_s4 = inlined_call_operand.hbm [shape: f32[3,8,16], index: 4, kind: input, shape index: {}]   ;;  %s4395_s5 = inlined_call_operand.vmem [shape: f32[3,256,128], index: 5, kind: input, shape index: {}]   ;;  %s4396_s6 = inlined_call_operand.vmem [shape: f32[1,128], index: 6, kind: input, shape index: {}]   ;;  %s4397_s7 = inlined_call_operand.hbm [shape: f32[3,4,8], index: 7, kind: input, shape index: {}]   ;;  %s4398_s8 = inlined_call_operand.vmem [shape: f32[3,128,64], index: 8, kind: input, shape index: {}]   ;;  %s4399_s9 = inlined_call_operand.hbm [shape: f32[1,64], index: 9, kind: input, shape index: {}]   ;;  %s4400_s10 = inlined_call_operand.hbm [shape: f32[3,2,4], index: 10, kind: input, shape index: {}]   ;;  %s4401_s11 = inlined_call_operand.vmem [shape: f32[3,64,10], index: 11, kind: input, shape index: {}]   ;;  %s4402_s12 = inlined_call_operand.hbm [shape: f32[1,10], index: 12, kind: input, shape index: {}]   ;;  %s4403_s13 = inlined_call_operand.hbm [shape: f32[1,2,2], index: 13, kind: input, shape index: {}]   ;;  %s4404_s14 = inlined_call_operand.vmem [shape: f32[10,10], index: 14, kind: input, shape index: {}]   ;;  %s4405_s15 = inlined_call_operand.hbm [shape: f32[1,10], index: 15, kind: input, shape index: {}]   ;;  %s4406_s16 = inlined_call_operand.hbm [shape: f32[10,10], index: 16, kind: input, shape index: {}]   ;;  %s4407_s17 = inlined_call_operand.hbm [shape: f32[1,10], index: 17, kind: input, shape index: {}]   ;;  %s4408_s18 = inlined_call_operand.hbm [shape: f32[2,10], index: 18, kind: output, shape index: {}]  }
   0x1   :  { %4410 = sst [smem:[#allocation28_spill]] %s4390_s0 }
   0x2   :  { %4411 = sst [smem:[#allocation29_spill]] %s4391_s1 }
   0x3   :  { %4412 = sst [smem:[#allocation30_spill]] %s4392_s2 }
   0x4   :  { %23 = vsyncpa [#allocation3], 0 }
   0x5   :  { %24 = vsyncpa [#allocation6], 0 }
   0x6   :  { %25 = vsyncpa [#allocation9], 0 }
   0x7   :  { %26 = vsyncpa [#allocation12], 0 }
   0x8   :  { %27 = vsyncpa [#allocation15], 0 }
   0x9   :  { %28 = vsyncpa [#allocation18], 0 }
   0xa   :  { %29 = vsyncpa [#allocation4], 0  ;;  %s3513_s27 = smov [#allocation5]  }
   0xb   :  { %s49_s28 = sshll.u32 %s3513_s27, 4  ;;  %s50_s28 = int_to_ptr.vmem [resolvable:$true] %s49_s28 }
   0xc   :  { %s3267_s29 = scalar_lea.vmem %s50_s28, 1536  ;;  %p3272_p1 = scmp.lt.s32.totalorder %s50_s28, %s50_s28 }
   0xd   :  { %p3268_p0 = scmp.ne.s32.totalorder %s50_s28, %s3267_s29  ;;  %p3273_p2 = scmp.lt.s32.totalorder %s3267_s29, %s3267_s29 }
   0xf   :  { %p3274_p3 = por %p3273_p2, %p3272_p1 }
  0x11   :  { %p3275_p4 = pnand %p3274_p3, %p3268_p0 }
  0x13   :  { %3278 = shalt.err (!%p3275_p4)
}
  0x14   :  { %s3514_s30 = smov 256   ;;  %s3515_s0 = smov 16  }
  0x15   :  { %s4413_s20 = sld [smem:[#allocation30_spill]]  ;;  %s3516_s21 = smov [#allocation8]  }
  0x16   :  { %s79_s22 = sshll.u32 %s3516_s21, 4  ;;  %s80_s22 = int_to_ptr.vmem [resolvable:$true] %s79_s22 }
  0x17   :  { %s3287_s2 = scalar_lea.vmem %s80_s22, 192  ;;  %p3292_p6 = scmp.lt.s32.totalorder %s80_s22, %s80_s22 }
  0x18   :  { %p3288_p5 = scmp.ne.s32.totalorder %s80_s22, %s3287_s2  ;;  %p3293_p7 = scmp.lt.s32.totalorder %s3287_s2, %s3287_s2 }
  0x1a   :  { %p3294_p8 = por %p3293_p7, %p3292_p6 }
  0x1b   :  { %55 = dma.hbm_to_vmem [thread:$0]  %s4413_s20, 1536, %s50_s28, [#allocation6], %s3514_s30, %s3514_s30, %s3515_s0  }
  0x1c   :  { %p3295_p9 = pnand %p3294_p8, %p3288_p5 }
  0x1e   :  { %3298 = shalt.err (!%p3295_p9)
}
  0x1f   :  { %s3517_s23 = smov 64   ;;  %s3518_s24 = smov 4  }
  0x20   :  { %85 = dma.hbm_to_vmem [thread:$0]  %s4397_s7, 192, %s80_s22, [#allocation9], %s3517_s23, %s3517_s23, %s3518_s24  }
  0x21   :  { %s3519_s27 = smov [#allocation11]  }
  0x22   :  { %s103_s29 = sshll.u32 %s3519_s27, 4  ;;  %s104_s29 = int_to_ptr.vmem [resolvable:$true] %s103_s29 }
  0x23   :  { %s3307_s28 = scalar_lea.vmem %s104_s29, 96  ;;  %p3312_p11 = scmp.lt.s32.totalorder %s104_s29, %s104_s29 }
  0x24   :  { %p3308_p10 = scmp.ne.s32.totalorder %s104_s29, %s3307_s28  ;;  %p3313_p12 = scmp.lt.s32.totalorder %s3307_s28, %s3307_s28 }
  0x26   :  { %p3314_p13 = por %p3313_p12, %p3312_p11 }
  0x28   :  { %p3315_p0 = pnand %p3314_p13, %p3308_p10 }
  0x2a   :  { %3318 = shalt.err (!%p3315_p0)
}
  0x2b   :  { %s3520_s30 = smov 32   ;;  %s3521_s0 = smov 2  }
  0x2c   :  { %109 = dma.hbm_to_vmem [thread:$0]  %s4400_s10, 96, %s104_s29, [#allocation12], %s3520_s30, %s3520_s30, %s3521_s0  }
  0x2d   :  { %s3522_s20 = smov [#allocation14]  }
  0x2e   :  { %s128_s21 = sshll.u32 %s3522_s20, 4  ;;  %s129_s21 = int_to_ptr.vmem [resolvable:$true] %s128_s21 }
  0x2f   :  { %s3327_s7 = scalar_lea.vmem %s129_s21, 32  ;;  %p3332_p2 = scmp.lt.s32.totalorder %s129_s21, %s129_s21 }
  0x30   :  { %p3328_p1 = scmp.ne.s32.totalorder %s129_s21, %s3327_s7  ;;  %p3333_p3 = scmp.lt.s32.totalorder %s3327_s7, %s3327_s7 }
  0x32   :  { %p3334_p4 = por %p3333_p3, %p3332_p2 }
  0x34   :  { %p3335_p5 = pnand %p3334_p4, %p3328_p1 }
  0x36   :  { %3338 = shalt.err (!%p3335_p5)
}
  0x37   :  { %131 = dma.hbm_to_vmem [thread:$0]  %s4403_s13, 32, %s129_s21, [#allocation15]  }
  0x38   :  { %s3523_s23 = smov [#allocation17]   ;;  %s3524_s25 = smov [#allocation2]  }
  0x39   :  { %s149_s24 = sshll.u32 %s3523_s23, 4  ;;  %s35_s26 = sshll.u32 %s3524_s25, 4  ;;  %s150_s24 = int_to_ptr.vmem [resolvable:$true] %s149_s24  ;;  %s36_s26 = int_to_ptr.vmem [resolvable:$true] %s35_s26 }
  0x3a   :  { %s3347_s10 = scalar_lea.vmem %s150_s24, 256  ;;  %p3352_p7 = scmp.lt.s32.totalorder %s150_s24, %s150_s24 }
  0x3b   :  { %p3348_p6 = scmp.ne.s32.totalorder %s150_s24, %s3347_s10  ;;  %p3353_p8 = scmp.lt.s32.totalorder %s3347_s10, %s3347_s10 }
  0x3d   :  { %p3354_p9 = por %p3353_p8, %p3352_p7 }
  0x3f   :  { %p3355_p10 = pnand %p3354_p9, %p3348_p6 }
  0x41   :  { %3358 = shalt.err (!%p3355_p10)
}
  0x42   :  { %s3525_s27 = smov 128   ;;  %s3526_s29 = smov 8  }
  0x43   :  { %155 = dma.hbm_to_vmem [thread:$0]  %s4406_s16, 256, %s150_s24, [#allocation18], %s3525_s27, %s3525_s27, %s3526_s29  }
  0x44   :  { %s3367_s13 = scalar_lea.vmem %s36_s26, 512  ;;  %p3372_p12 = scmp.lt.s32.totalorder %s36_s26, %s36_s26 }
  0x45   :  { %p3368_p11 = scmp.ne.s32.totalorder %s36_s26, %s3367_s13  ;;  %p3373_p13 = scmp.lt.s32.totalorder %s3367_s13, %s3367_s13 }
  0x47   :  { %p3374_p0 = por %p3373_p13, %p3372_p12 }
  0x49   :  { %p3375_p1 = pnand %p3374_p0, %p3368_p11 }
  0x4b   :  { %3378 = shalt.err (!%p3375_p1)
}
  0x4c   :  { %s4414_s1 = sld [smem:[#allocation28_spill]]  ;;  %s3527_s20 = smov [#allocation7]  }
  0x4d   :  { %s63_s21 = sshll.u32 %s3527_s20, 4  ;;  %s3528_s7 = smov [#allocation10]   ;;  %s64_s21 = int_to_ptr.vmem [resolvable:$true] %s63_s21 }
  0x4e   :  { %s94_s22 = sshll.u32 %s3528_s7, 4  ;;  %s3387_s2 = scalar_lea.vmem %s64_s21, 384  ;;  %s95_s22 = int_to_ptr.vmem [resolvable:$true] %s94_s22 }
  0x4f   :  { %p3388_p2 = scmp.ne.s32.totalorder %s64_s21, %s3387_s2  ;;  %p3392_p3 = scmp.lt.s32.totalorder %s64_s21, %s64_s21 }
  0x50   :  { %p3393_p4 = scmp.lt.s32.totalorder %s3387_s2, %s3387_s2 }
  0x52   :  { %41 = dma.hbm_to_vmem [thread:$0]  %s4414_s1, 512, %s36_s26, [#allocation3], %s3525_s27, %s3525_s27, %s3526_s29  }
  0x53   :  { %p3394_p5 = por %p3393_p4, %p3392_p3 }
  0x55   :  { %p3395_p6 = pnand %p3394_p5, %p3388_p2 }
  0x57   :  { %3398 = shalt.err (!%p3395_p6)
}
  0x58   :  { %69 = dma.hbm_to_vmem [thread:$0]  %s4394_s4, 384, %s64_s21, [#allocation6], %s3525_s27, %s3525_s27, %s3526_s29  }
  0x59   :  { %s3407_s24 = scalar_lea.vmem %s95_s22, 16  ;;  %s3411_s25 = scalar_lea.vmem %s95_s22, 32 }
  0x5a   :  { %p3408_p7 = scmp.ne.s32.totalorder %s95_s22, %s3407_s24  ;;  %p3412_p8 = scmp.lt.s32.totalorder %s95_s22, %s95_s22 }
  0x5b   :  { %p3413_p9 = scmp.lt.s32.totalorder %s3411_s25, %s3407_s24 }
  0x5d   :  { %p3414_p10 = por %p3413_p9, %p3412_p8 }
  0x5f   :  { %p3415_p11 = pnand %p3414_p10, %p3408_p7 }
  0x61   :  { %3418 = shalt.err (!%p3415_p11)
}
  0x62   :  { %97 = dma.hbm_to_vmem [thread:$0]  %s4399_s9, 16, %s95_s22, [#allocation9]  }
  0x63   :  { %s3529_s28 = smov [#allocation13]   ;;  %s3530_s13 = smov [#allocation16]  }
  0x64   :  { %s118_s30 = sshll.u32 %s3529_s28, 4  ;;  %s140_s0 = sshll.u32 %s3530_s13, 4  ;;  %s119_s30 = int_to_ptr.vmem [resolvable:$true] %s118_s30  ;;  %s141_s0 = int_to_ptr.vmem [resolvable:$true] %s140_s0 }
  0x65   :  { %s3427_s19 = scalar_lea.vmem %s119_s30, 16  ;;  %s3431_s4 = scalar_lea.vmem %s119_s30, 32 }
  0x66   :  { %p3428_p12 = scmp.ne.s32.totalorder %s119_s30, %s3427_s19  ;;  %p3432_p13 = scmp.lt.s32.totalorder %s119_s30, %s119_s30 }
  0x67   :  { %p3433_p0 = scmp.lt.s32.totalorder %s3431_s4, %s3427_s19 }
  0x69   :  { %p3434_p1 = por %p3433_p0, %p3432_p13 }
  0x6b   :  { %p3435_p2 = pnand %p3434_p1, %p3428_p12 }
  0x6d   :  { %3438 = shalt.err (!%p3435_p2)
}
  0x6e   :  { %121 = dma.hbm_to_vmem [thread:$0]  %s4402_s12, 16, %s119_s30, [#allocation12]  }
  0x6f   :  { %s3447_s1 = scalar_lea.vmem %s141_s0, 16  ;;  %s3451_s9 = scalar_lea.vmem %s141_s0, 32 }
  0x70   :  { %p3448_p3 = scmp.ne.s32.totalorder %s141_s0, %s3447_s1  ;;  %p3452_p4 = scmp.lt.s32.totalorder %s141_s0, %s141_s0 }
  0x71   :  { %p3453_p5 = scmp.lt.s32.totalorder %s3451_s9, %s3447_s1 }
  0x73   :  { %p3454_p6 = por %p3453_p5, %p3452_p4 }
  0x75   :  { %p3455_p7 = pnand %p3454_p6, %p3448_p3 }
  0x77   :  { %3458 = shalt.err (!%p3455_p7)
}
  0x78   :  { %143 = dma.hbm_to_vmem [thread:$0]  %s4405_s15, 16, %s141_s0, [#allocation15]  }
  0x79   :  { %s3531_s7 = smov [#allocation19]  }
  0x7a   :  { %s162_s22 = sshll.u32 %s3531_s7, 4  ;;  %s163_s22 = int_to_ptr.vmem [resolvable:$true] %s162_s22 }
  0x7b   :  { %s3467_s2 = scalar_lea.vmem %s163_s22, 16  ;;  %s3471_s16 = scalar_lea.vmem %s163_s22, 32 }
  0x7c   :  { %p3468_p8 = scmp.ne.s32.totalorder %s163_s22, %s3467_s2  ;;  %p3472_p9 = scmp.lt.s32.totalorder %s163_s22, %s163_s22 }
  0x7d   :  { %p3473_p10 = scmp.lt.s32.totalorder %s3471_s16, %s3467_s2 }
  0x7f   :  { %p3474_p11 = por %p3473_p10, %p3472_p9 }
  0x81   :  { %p3475_p12 = pnand %p3474_p11, %p3468_p8 }
  0x83   :  { %3478 = shalt.err (!%p3475_p12)
}
  0x84   :  { %165 = dma.hbm_to_vmem [thread:$0]  %s4407_s17, 16, %s163_s22, [#allocation18]  }
  0x85   :  { %3499 = dma.done.wait [#allocation3], 512  }
  0x86   :  { %3500 = vsyncadd [#allocation3], 4294966784 }
  0x87   :  { %3501 = dma.done.wait [#allocation6], 1920  }
  0x88   :  { %3502 = vsyncadd [#allocation6], 4294965376 }
  0x89   :  { %3503 = dma.done.wait [#allocation9], 208  }
  0x8a   :  { %3504 = vsyncadd [#allocation9], 4294967088 }
  0x8b   :  { %3505 = dma.done.wait [#allocation12], 112  }
  0x8c   :  { %3506 = vsyncadd [#allocation12], 4294967184 }
  0x8d   :  { %3507 = dma.done.wait [#allocation15], 48  }
  0x8e   :  { %3508 = vsyncadd [#allocation15], 4294967248 }
  0x8f   :  { %3509 = dma.done.wait [#allocation18], 272  }
  0x90   :  { %3510 = vsyncadd [#allocation18], 4294967024  ;;  %v202_v0 = vld [vmem:[#allocation2 + $0x18] sm:$0xff]  ;;  %v201_v1 = vld [vmem:[#allocation2 + $0x10] sm:$0xff]  ;;  %s4415_s24 = sld [smem:[#allocation29_spill]]  ;;  %vm205_vm0 = vcmask 261120  }
  0x91   :  { %2961 = vmatprep.subr.mxu0 %v202_v0  ;;  %2972 = vmatprep.subr.mxu1 %v202_v0  ;;  %v200_v2 = vld [vmem:[#allocation2 + $0x8] sm:$0xff]  ;;  %v199_v3 = vld [vmem:[#allocation2] sm:$0xff]  ;;  %v379_v8 = vld [vmem:[#allocation5 + $0x38] sm:$0xff]  ;;  %v3532_v16 = vmov 0.0   ;;  %vm380_vm1 = vcmask 130048   ;;  %vm3533_vm2 = vmmov 0  }
  0x92   :  { %2962 = vmatpush3.msra.mxu0 %v202_v0  ;;  %2973 = vmatpush3.msra.mxu1 %v202_v0  ;;  %v290_v9 = vld [vmem:[#allocation5 + $0x18] sm:$0xff]  ;;  %v378_v10 = vld [vmem:[#allocation5 + $0x30] sm:$0xff]  ;;  %v377_v12 = vld [vmem:[#allocation5 + $0x28] sm:$0xff]  ;;  %vm1309_vm3 = vcmask 64512   ;;  %vm1812_vm4 = vcmask 1043456   ;;  %vm1808_vm5 = vcmask 31744  }
  0x93   :  { %2963 = vmatprep.subr.mxu0 %v201_v1  ;;  %2974 = vmatprep.subr.mxu1 %v201_v1  ;;  %v289_v11 = vld [vmem:[#allocation5 + $0x10] sm:$0xff]  ;;  %v288_v13 = vld [vmem:[#allocation5 + $0x8] sm:$0xff]  ;;  %v376_v14 = vld [vmem:[#allocation5 + $0x20] sm:$0xff]  ;;  %vm1978_vm6 = vcmask 523264   ;;  %vm2301_vm7 = vcmask 1041408   ;;  %vm2297_vm8 = vcmask 15360  }
  0x94   :  { %2964 = vmatpush3.msra.mxu0 %v201_v1  ;;  %2975 = vmatpush3.msra.mxu1 %v201_v1  ;;  %v287_v15 = vld [vmem:[#allocation5] sm:$0xff]  ;;  %v635_v23 = vld [vmem:[#allocation5 + $0x58] sm:$0xff]  ;;  %v634_v24 = vld [vmem:[#allocation5 + $0x50] sm:$0xff]  ;;  %vm2377_vm9 = vcmask 80896   ;;  %vm2455_vm10 = vcmask 74752  }
  0x95   :  { %2965 = vmatprep.subr.mxu0 %v200_v2  ;;  %2976 = vmatprep.subr.mxu1 %v200_v2  ;;  %v633_v25 = vld [vmem:[#allocation5 + $0x48] sm:$0xff]  ;;  %v632_v26 = vld [vmem:[#allocation5 + $0x40] sm:$0xff]  ;;  %v2635_v33 = vld [vmem:[%s4395_s5 + $0x1f8] sm:$0xff] }
  0x96   :  { %v203_v4 = vld [vmem:[%s4415_s24] sm:$0xff]  ;;  %2966 = vmatpush3.msra.mxu0 %v200_v2  ;;  %2977 = vmatpush3.msra.mxu1 %v200_v2  ;;  %v2588_v5 = vld [vmem:[%s4415_s24 + $0x10] sm:$0xff]  ;;  %v204_v6 = vld [vmem:[%s4415_s24 + $0x8] sm:$0xff] }
  0x97   :  { %2967 = vmatprep.subr.mxu0 %v199_v3  ;;  %2978 = vmatprep.subr.mxu1 %v199_v3  ;;  %v2589_v7 = vld [vmem:[%s4415_s24 + $0x18] sm:$0xff]  ;;  %v2596_v21 = vld [vmem:[%s4415_s24 + $0x20] sm:$0xff]  ;;  %v2597_v22 = vld [vmem:[%s4415_s24 + $0x28] sm:$0xff] }
  0x98   :  { %2968 = vmatpush3.msra.mxu0 %v199_v3  ;;  %2969 = vmatprep.mubr.msk.f32.mxu0 %vm205_vm0, %v203_v4  ;;  %v2619_v34 = vld [vmem:[%s4395_s5 + $0x178] sm:$0xff]  ;;  %v2634_v35 = vld [vmem:[%s4395_s5 + $0x1f0] sm:$0xff]  ;;  %v2633_v37 = vld [vmem:[%s4395_s5 + $0x1e8] sm:$0xff] }
  0x99   :  { %2979 = vmatpush3.msra.mxu1 %v199_v3  ;;  %2980 = vmatprep.mubr.msk.f32.mxu1 %vm205_vm0, %v2588_v5  ;;  %v2618_v36 = vld [vmem:[%s4395_s5 + $0x170] sm:$0xff]  ;;  %v2617_v38 = vld [vmem:[%s4395_s5 + $0x168] sm:$0xff]  ;;  %v2632_v39 = vld [vmem:[%s4395_s5 + $0x1e0] sm:$0xff] }
  0x9a   :  { %2970 = vmatmul.mubr.msk.f32.vlgmr.msra.gmra.mxu0 %vm205_vm0, %v204_v6  ;;  %2981 = vmatmul.mubr.msk.f32.vlgmr.msra.gmra.mxu1 %vm205_vm0, %v2589_v7  ;;  %v2616_v40 = vld [vmem:[%s4395_s5 + $0x160] sm:$0xff]  ;;  %v2631_v41 = vld [vmem:[%s4395_s5 + $0x1d8] sm:$0xff]  ;;  %v2630_v43 = vld [vmem:[%s4395_s5 + $0x1d0] sm:$0xff] }
  0x9b   :  { %415 = vmatprep.subr.mxu0 %v379_v8  ;;  %498 = vmatprep.subr.mxu1 %v290_v9  ;;  %v2615_v42 = vld [vmem:[%s4395_s5 + $0x158] sm:$0xff]  ;;  %v2614_v44 = vld [vmem:[%s4395_s5 + $0x150] sm:$0xff]  ;;  %v2629_v45 = vld [vmem:[%s4395_s5 + $0x1c8] sm:$0xff] }
  0x9c   :  { %416 = vmatpush1.msra.mxu0 %v378_v10  ;;  %499 = vmatpush1.msra.mxu1 %v289_v11  ;;  %v2613_v46 = vld [vmem:[%s4395_s5 + $0x148] sm:$0xff]  ;;  %v2628_v47 = vld [vmem:[%s4395_s5 + $0x1c0] sm:$0xff]  ;;  %v2627_v49 = vld [vmem:[%s4395_s5 + $0x1b8] sm:$0xff] }
  0x9d   :  { %417 = vmatprep.subr.mxu0 %v377_v12  ;;  %500 = vmatprep.subr.mxu1 %v288_v13  ;;  %v2612_v48 = vld [vmem:[%s4395_s5 + $0x140] sm:$0xff]  ;;  %v2611_v50 = vld [vmem:[%s4395_s5 + $0x138] sm:$0xff]  ;;  %v2626_v51 = vld [vmem:[%s4395_s5 + $0x1b0] sm:$0xff] }
  0x9e   :  { %418 = vmatpush1.msra.mxu0 %v376_v14  ;;  %451 = vmatprep.mubr.f32.mxu0 %v3532_v16  ;;  %v2610_v52 = vld [vmem:[%s4395_s5 + $0x130] sm:$0xff]  ;;  %v2625_v53 = vld [vmem:[%s4395_s5 + $0x1a8] sm:$0xff]  ;;  %v2624_v55 = vld [vmem:[%s4395_s5 + $0x1a0] sm:$0xff] }
  0x9f   :  { %501 = vmatpush1.msra.mxu1 %v287_v15  ;;  %534 = vmatprep.mubr.f32.mxu1 %v3532_v16  ;;  %v2609_v54 = vld [vmem:[%s4395_s5 + $0x128] sm:$0xff]  ;;  %v2608_v56 = vld [vmem:[%s4395_s5 + $0x120] sm:$0xff]  ;;  %v2623_v57 = vld [vmem:[%s4395_s5 + $0x198] sm:$0xff] }
  0xa0   :  { %2983 = vmatprep.subr.mxu0 %v202_v0  ;;  %670 = vmatprep.subr.mxu1 %v635_v23  ;;  %v2607_v58 = vld [vmem:[%s4395_s5 + $0x118] sm:$0xff]  ;;  %v2622_v59 = vld [vmem:[%s4395_s5 + $0x190] sm:$0xff]  ;;  %v2621_v61 = vld [vmem:[%s4395_s5 + $0x188] sm:$0xff] }
  0xa1   :  { %v2606_v60 = vld [vmem:[%s4395_s5 + $0x110] sm:$0xff]  ;;  %v2605_v62 = vld [vmem:[%s4395_s5 + $0x108] sm:$0xff]  ;;  %v2620_v63 = vld [vmem:[%s4395_s5 + $0x180] sm:$0xff] }
  0xa2   :  { %v723_v7 = vld [vmem:[%s4393_s3] sm:$0x3] }
 0x15a   :  { %v2971_v17 = vpop.f32.mrf.mxu0  ;;  %v2982_v18 = vpop.f32.mrf.mxu1 }
 0x15c   :  { %v278_v19 = vpop.f32.mrf.mxu0  ;;  %v366_v20 = vpop.f32.mrf.mxu1 }
 0x15d   :  { %2592 = vmatmul.mubr.msk.f32.vlgmr.msra.gmra.mxu0 %vm380_vm1, %v366_v20  ;;  %2594 = vmatmul.mubr.msk.f32.vlgmr.msra.gmra.mxu1 %vm380_vm1, %v278_v19 }
 0x15e   :  { %2984 = vmatpush3.msra.mxu0 %v202_v0  ;;  %457 = vmatprep.mubr.f32.mxu0 %v3532_v16  ;;  %v2604_v0 = vld [vmem:[%s4395_s5 + $0x100] sm:$0xff] }
 0x15f   :  { %2985 = vmatprep.subr.mxu0 %v201_v1  ;;  %540 = vmatprep.mubr.f32.mxu1 %v3532_v16 }
 0x160   :  { %2986 = vmatpush3.msra.mxu0 %v201_v1  ;;  %671 = vmatpush1.msra.mxu1 %v634_v24 }
 0x161   :  { %2593 = vmatmul.mubr.msk.f32.gmra.mxu0 %vm380_vm1, %v2982_v18  ;;  %2595 = vmatmul.mubr.msk.f32.gmra.mxu1 %vm380_vm1, %v2971_v17 }
 0x162   :  { %2987 = vmatprep.subr.mxu0 %v200_v2  ;;  %2991 = vmatprep.mubr.msk.f32.mxu0 %vm205_vm0, %v2596_v21 }
 0x163   :  { %2988 = vmatpush3.msra.mxu0 %v200_v2  ;;  %706 = vmatprep.mubr.f32.mxu1 %v3532_v16  ;;  %v725_v2 = vlaneseq }
 0x164   :  { %2989 = vmatprep.subr.mxu0 %v199_v3  ;;  %672 = vmatprep.subr.mxu1 %v633_v25 }
 0x165   :  { %2990 = vmatpush3.msra.mxu0 %v199_v3  ;;  %673 = vmatpush1.msra.mxu1 %v632_v26  ;;  %v726_v4 = vshrl.u32 %v725_v2, 7  ;;  %v842_v2 = vld [vmem:[%s4395_s5 + $0x40] sm:$0xff] }
 0x166   :  { %2992 = vmatmul.mubr.msk.f32.vlgmr.msra.gmra.mxu0 %vm205_vm0, %v2597_v22  ;;  %2758 = vmatprep.subr.mxu1 %v2635_v33 }
 0x167   :  { %827 = vmatprep.mubr.f32.mxu0 %v3532_v16  ;;  %v727_v6 = vsub.s32 0, %v726_v4  ;;  %v731_v8 = vsub.s32 1, %v726_v4  ;;  %v841_v4 = vld [vmem:[%s4395_s5 + $0x38] sm:$0xff] }
 0x169   :  { %v728_v11 = vrot.slane %v723_v7, %v727_v6  ;;  %v732_v15 = vrot.slane %v723_v7, %v731_v8  ;;  %v840_v6 = vld [vmem:[%s4395_s5 + $0x30] sm:$0xff]  ;;  %v855_v7 = vld [vmem:[%s4395_s5 + $0xa8] sm:$0xff] }
 0x16a   :  { %v839_v8 = vld [vmem:[%s4395_s5 + $0x28] sm:$0xff] }
 0x21d   :  { %v3697_v27 = vpop.f32.mrf.mxu0  ;;  %v536_v1 = vpop.f32.mrf.mxu1 }
 0x21e   :  { %v537_v10 = vadd.f32 %v536_v1, %v3697_v27  ;;  %v858_v1 = vld [vmem:[%s4395_s5 + $0xc0] sm:$0xff] }
 0x21f   :  { %v3699_v28 = vpop.f32.mrf.mxu0  ;;  %v538_v3 = vpop.f32.mrf.mxu1 }
 0x220   :  { %v539_v13 = vadd.f32 %v538_v3, %v3699_v28  ;;  %v857_v3 = vld [vmem:[%s4395_s5 + $0xb8] sm:$0xff] }
 0x221   :  { %v3701_v29 = vpop.f32.mrf.mxu0  ;;  %v542_v5 = vpop.f32.mrf.mxu1 }
 0x222   :  { %v543_v18 = vadd.f32 %v542_v5, %v3701_v29  ;;  %v856_v5 = vld [vmem:[%s4395_s5 + $0xb0] sm:$0xff] }
 0x223   :  { %v3703_v30 = vpop.f32.mrf.mxu0  ;;  %v544_v9 = vpop.f32.mrf.mxu1 }
 0x224   :  { %v545_v22 = vadd.f32 %v544_v9, %v3703_v30  ;;  %v854_v9 = vld [vmem:[%s4395_s5 + $0xa0] sm:$0xff] }
 0x226   :  { %v2993_v31 = vpop.f32.mrf.mxu0 }
 0x228   :  { %v622_v32 = vpop.f32.mrf.mxu0 }
 0x229   :  { %2600 = vmatmul.mubr.msk.f32.vlgmr.msra.gmra.mxu1 %vm380_vm1, %v622_v32 }
 0x22a   :  { %712 = vmatprep.mubr.f32.mxu1 %v3532_v16  ;;  %2759 = vmatpush3.msra.mxu1 %v2619_v34 }
 0x22b   :  { %2760 = vmatprep.subr.mxu1 %v2634_v35 }
 0x22c   :  { %2761 = vmatpush3.msra.mxu1 %v2618_v36 }
 0x22d   :  { %2601 = vmatmul.mubr.msk.f32.gmra.mxu1 %vm380_vm1, %v2993_v31  ;;  %2762 = vmatprep.subr.mxu1 %v2633_v37 }
 0x22e   :  { %2763 = vmatpush3.msra.mxu1 %v2617_v38 }
 0x22f   :  { %2764 = vmatprep.subr.mxu1 %v2632_v39 }
 0x230   :  { %2765 = vmatpush3.msra.mxu1 %v2616_v40 }
 0x231   :  { %2766 = vmatprep.subr.mxu1 %v2631_v41 }
 0x232   :  { %2767 = vmatpush3.msra.mxu1 %v2615_v42 }
 0x233   :  { %2768 = vmatprep.subr.mxu1 %v2630_v43 }
 0x234   :  { %2769 = vmatpush3.msra.mxu1 %v2614_v44 }
 0x235   :  { %2770 = vmatprep.subr.mxu1 %v2629_v45 }
 0x236   :  { %2771 = vmatpush3.msra.mxu1 %v2613_v46 }
 0x237   :  { %2772 = vmatprep.subr.mxu1 %v2628_v47 }
 0x238   :  { %2773 = vmatpush3.msra.mxu1 %v2612_v48  ;;  %v759_v48 = vld [vmem:[#allocation7] sm:$0xff] }
 0x239   :  { %2774 = vmatprep.subr.mxu1 %v2627_v49 }
 0x23a   :  { %2775 = vmatpush3.msra.mxu1 %v2611_v50  ;;  %v867_v50 = vld [vmem:[#allocation7 + $0x8] sm:$0xff] }
 0x23b   :  { %2776 = vmatprep.subr.mxu1 %v2626_v51  ;;  %v865_v51 = vld [vmem:[%s4395_s5 + $0xf8] sm:$0xff] }
 0x23c   :  { %2777 = vmatpush3.msra.mxu1 %v2610_v52  ;;  %v849_v52 = vld [vmem:[%s4395_s5 + $0x78] sm:$0xff] }
 0x23d   :  { %2778 = vmatprep.subr.mxu1 %v2625_v53  ;;  %v864_v53 = vld [vmem:[%s4395_s5 + $0xf0] sm:$0xff] }
 0x23e   :  { %2779 = vmatpush3.msra.mxu1 %v2609_v54  ;;  %v848_v54 = vld [vmem:[%s4395_s5 + $0x70] sm:$0xff] }
 0x23f   :  { %2780 = vmatprep.subr.mxu1 %v2624_v55  ;;  %v863_v55 = vld [vmem:[%s4395_s5 + $0xe8] sm:$0xff] }
 0x240   :  { %2781 = vmatpush3.msra.mxu1 %v2608_v56  ;;  %v847_v56 = vld [vmem:[%s4395_s5 + $0x68] sm:$0xff] }
 0x241   :  { %2782 = vmatprep.subr.mxu1 %v2623_v57  ;;  %v862_v57 = vld [vmem:[%s4395_s5 + $0xe0] sm:$0xff] }
 0x242   :  { %2783 = vmatpush3.msra.mxu1 %v2607_v58  ;;  %v846_v58 = vld [vmem:[%s4395_s5 + $0x60] sm:$0xff] }
 0x243   :  { %2784 = vmatprep.subr.mxu1 %v2622_v59  ;;  %v861_v59 = vld [vmem:[%s4395_s5 + $0xd8] sm:$0xff] }
 0x244   :  { %2785 = vmatpush3.msra.mxu1 %v2606_v60  ;;  %v845_v60 = vld [vmem:[%s4395_s5 + $0x58] sm:$0xff] }
 0x245   :  { %2786 = vmatprep.subr.mxu1 %v2621_v61  ;;  %v860_v61 = vld [vmem:[%s4395_s5 + $0xd0] sm:$0xff] }
 0x246   :  { %2787 = vmatpush3.msra.mxu1 %v2605_v62  ;;  %v844_v62 = vld [vmem:[%s4395_s5 + $0x50] sm:$0xff] }
 0x247   :  { %2788 = vmatprep.subr.mxu1 %v2620_v63  ;;  %v859_v63 = vld [vmem:[%s4395_s5 + $0xc8] sm:$0xff] }
 0x248   :  { %2789 = vmatpush3.msra.mxu1 %v2604_v0  ;;  %v843_v0 = vld [vmem:[%s4395_s5 + $0x48] sm:$0xff] }
 0x2e9   :  { %v708_v12 = vpop.f32.mrf.mxu1 }
 0x2ea   :  { %v719_v14 = vadd.f32 %v708_v12, %v537_v10  ;;  %v838_v10 = vld [vmem:[%s4395_s5 + $0x20] sm:$0xff]  ;;  %v837_v12 = vld [vmem:[%s4395_s5 + $0x18] sm:$0xff] }
 0x2eb   :  { %v710_v17 = vpop.f32.mrf.mxu1 }
 0x2ec   :  { %v735_v19 = vadd.f32 %v728_v11, %v719_v14  ;;  %v720_v20 = vadd.f32 %v710_v17, %v539_v13  ;;  %v852_v13 = vld [vmem:[%s4395_s5 + $0x90] sm:$0xff]  ;;  %v835_v17 = vld [vmem:[%s4395_s5 + $0x8] sm:$0xff] }
 0x2ed   :  { %v714_v21 = vpop.f32.mrf.mxu1  ;;  %v836_v14 = vld [vmem:[%s4395_s5 + $0x10] sm:$0xff] }
 0x2ee   :  { %v736_v23 = vadd.f32 %v732_v15, %v720_v20  ;;  %v721_v24 = vadd.f32 %v714_v21, %v543_v18  ;;  %v739_v25 = vsub.f32 0.0, %v735_v19  ;;  %v850_v18 = vld [vmem:[%s4395_s5 + $0x80] sm:$0xff] }
 0x2ef   :  { %v716_v26 = vpop.f32.mrf.mxu1  ;;  %v834_v19 = vld [vmem:[%s4395_s5] sm:$0xff] }
 0x2f0   :  { %v740_v31 = vsub.f32 0.0, %v736_v23  ;;  %v737_v27 = vadd.f32 %v728_v11, %v721_v24  ;;  %v722_v32 = vadd.f32 %v716_v26, %v545_v22  ;;  %v743_v35 = vmul.f32 1.442695, %v739_v25  ;;  %v853_v11 = vld [vmem:[%s4395_s5 + $0x98] sm:$0xff]  ;;  %v1116_v24 = vld [vmem:[#allocation7 + $0x10] sm:$0xff] }
 0x2f1   :  { %v2668_v25 = vld [vmem:[%s4395_s5 + $0x2f8] sm:$0xff] }
 0x2f2   :  { %v745_v33 = vmul.f32 1.442695, %v740_v31  ;;  %v741_v34 = vsub.f32 0.0, %v737_v27  ;;  %v738_v28 = vadd.f32 %v732_v15, %v722_v32  ;;  %v851_v15 = vld [vmem:[%s4395_s5 + $0x88] sm:$0xff]  ;;  %v2652_v26 = vld [vmem:[%s4395_s5 + $0x278] sm:$0xff]  ;;  %v2667_v31 = vld [vmem:[%s4395_s5 + $0x2f0] sm:$0xff] }
 0x2f3   :  { %v2651_v27 = vld [vmem:[%s4395_s5 + $0x270] sm:$0xff]  ;;  %v2666_v32 = vld [vmem:[%s4395_s5 + $0x2e8] sm:$0xff] }
 0x2f4   :  { %v747_v36 = vmul.f32 1.442695, %v741_v34  ;;  %v742_v37 = vsub.f32 0.0, %v738_v28  ;;  %3227 = vpow2.f32 %v745_v33  ;;  %v2650_v33 = vld [vmem:[%s4395_s5 + $0x268] sm:$0xff]  ;;  %v2665_v34 = vld [vmem:[%s4395_s5 + $0x2e0] sm:$0xff] }
 0x2f5   :  { %v2649_v28 = vld [vmem:[%s4395_s5 + $0x260] sm:$0xff] }
 0x2f6   :  { %3229 = vpow2.f32 %v747_v36  ;;  %v749_v29 = vmul.f32 1.442695, %v742_v37  ;;  %v2648_v36 = vld [vmem:[%s4395_s5 + $0x258] sm:$0xff]  ;;  %v2663_v37 = vld [vmem:[%s4395_s5 + $0x2d0] sm:$0xff] }
 0x2f7   :  { %3231 = vpow2.f32 %v743_v35  ;;  %v2664_v35 = vld [vmem:[%s4395_s5 + $0x2d8] sm:$0xff] }
 0x2f8   :  { %3233 = vpow2.f32 %v749_v29  ;;  %v2647_v29 = vld [vmem:[%s4395_s5 + $0x250] sm:$0xff] }
 0x301   :  { %v3228_v38 = vpop.eup %3227 }
 0x302   :  { %v752_v42 = vadd.f32 1.0, %v3228_v38  ;;  %v2662_v38 = vld [vmem:[%s4395_s5 + $0x2c8] sm:$0xff] }
 0x303   :  { %v3230_v30 = vpop.eup %3229 }
 0x304   :  { %v3232_v39 = vpop.eup %3231  ;;  %v753_v41 = vadd.f32 1.0, %v3230_v30  ;;  %v2646_v30 = vld [vmem:[%s4395_s5 + $0x248] sm:$0xff] }
 0x305   :  { %v3234_v40 = vpop.eup %3233  ;;  %v751_v44 = vadd.f32 1.0, %v3232_v39  ;;  %v2661_v39 = vld [vmem:[%s4395_s5 + $0x2c0] sm:$0xff] }
 0x306   :  { %v754_v43 = vadd.f32 1.0, %v3234_v40  ;;  %v2645_v40 = vld [vmem:[%s4395_s5 + $0x240] sm:$0xff] }
 0x308   :  { %3235 = vrcp.f32 %v754_v43  ;;  %v2659_v43 = vld [vmem:[%s4395_s5 + $0x2b0] sm:$0xff] }
 0x309   :  { %3237 = vrcp.f32 %v753_v41  ;;  %v2660_v41 = vld [vmem:[%s4395_s5 + $0x2b8] sm:$0xff] }
 0x30a   :  { %3239 = vrcp.f32 %v752_v42  ;;  %v2644_v42 = vld [vmem:[%s4395_s5 + $0x238] sm:$0xff] }
 0x30b   :  { %3241 = vrcp.f32 %v751_v44  ;;  %v2643_v44 = vld [vmem:[%s4395_s5 + $0x230] sm:$0xff] }
 0x315   :  { %v3236_v45 = vpop.eup %3235 }
 0x316   :  { %v3811_v46 = vpop.eup %3237  ;;  %791 = vmatprep.subr.mxu0 %v3236_v45  ;;  %1148 = vmatprep.subr.mxu1 %v3236_v45 }
 0x317   :  { %v3813_v47 = vpop.eup %3239  ;;  %792 = vmatpush1.msra.mxu0 %v3811_v46 }
 0x318   :  { %v3816_v49 = vpop.eup %3241  ;;  %793 = vmatprep.subr.mxu0 %v3813_v47 }
 0x319   :  { %794 = vmatpush1.msra.mxu0 %v3816_v49 }
 0x31a   :  { %2602 = vmatmul.mubr.msk.f32.vlgmr.msra.gmra.mxu0 %vm380_vm1, %v759_v48  ;;  %899 = vmatprep.subr.mxu0 %v3236_v45  ;;  %v2658_v45 = vld [vmem:[%s4395_s5 + $0x2a8] sm:$0xff]  ;;  %v2641_v48 = vld [vmem:[%s4395_s5 + $0x220] sm:$0xff] }
 0x31b   :  { %900 = vmatpush1.msra.mxu0 %v3811_v46  ;;  %935 = vmatprep.mubr.f32.mxu0 %v3532_v16 }
 0x31c   :  { %901 = vmatprep.subr.mxu0 %v3813_v47 }
 0x31d   :  { %902 = vmatpush1.msra.mxu0 %v3816_v49 }
 0x31e   :  { %2603 = vmatmul.mubr.msk.f32.vlgmr.msra.gmra.mxu0 %vm380_vm1, %v867_v50  ;;  %2793 = vmatprep.subr.mxu0 %v865_v51  ;;  %v2640_v50 = vld [vmem:[%s4395_s5 + $0x218] sm:$0xff]  ;;  %v2655_v51 = vld [vmem:[%s4395_s5 + $0x290] sm:$0xff] }
 0x31f   :  { %2794 = vmatpush3.msra.mxu0 %v849_v52  ;;  %v2639_v52 = vld [vmem:[%s4395_s5 + $0x210] sm:$0xff] }
 0x320   :  { %2795 = vmatprep.subr.mxu0 %v864_v53  ;;  %v2654_v53 = vld [vmem:[%s4395_s5 + $0x288] sm:$0xff] }
 0x321   :  { %2796 = vmatpush3.msra.mxu0 %v848_v54  ;;  %v2638_v54 = vld [vmem:[%s4395_s5 + $0x208] sm:$0xff] }
 0x322   :  { %2797 = vmatprep.subr.mxu0 %v863_v55  ;;  %v2653_v55 = vld [vmem:[%s4395_s5 + $0x280] sm:$0xff] }
 0x323   :  { %2798 = vmatpush3.msra.mxu0 %v847_v56  ;;  %v2637_v56 = vld [vmem:[%s4395_s5 + $0x200] sm:$0xff] }
 0x324   :  { %2799 = vmatprep.subr.mxu0 %v862_v57 }
 0x325   :  { %2800 = vmatpush3.msra.mxu0 %v846_v58 }
 0x326   :  { %2801 = vmatprep.subr.mxu0 %v861_v59 }
 0x327   :  { %2802 = vmatpush3.msra.mxu0 %v845_v60 }
 0x328   :  { %2803 = vmatprep.subr.mxu0 %v860_v61 }
 0x329   :  { %2804 = vmatpush3.msra.mxu0 %v844_v62  ;;  %v1398_v62 = vld [vmem:[%s4398_s8 + $0x78] sm:$0xff] }
 0x32a   :  { %2805 = vmatprep.subr.mxu0 %v859_v63  ;;  %v1397_v63 = vld [vmem:[%s4398_s8 + $0x70] sm:$0xff] }
 0x32b   :  { %2806 = vmatpush3.msra.mxu0 %v843_v0  ;;  %v1396_v0 = vld [vmem:[%s4398_s8 + $0x68] sm:$0xff] }
 0x32c   :  { %2807 = vmatprep.subr.mxu0 %v858_v1  ;;  %v1395_v1 = vld [vmem:[%s4398_s8 + $0x60] sm:$0xff] }
 0x32d   :  { %2808 = vmatpush3.msra.mxu0 %v842_v2  ;;  %v1394_v2 = vld [vmem:[%s4398_s8 + $0x58] sm:$0xff] }
 0x32e   :  { %2809 = vmatprep.subr.mxu0 %v857_v3  ;;  %v1393_v3 = vld [vmem:[%s4398_s8 + $0x50] sm:$0xff] }
 0x32f   :  { %2810 = vmatpush3.msra.mxu0 %v841_v4  ;;  %v1392_v4 = vld [vmem:[%s4398_s8 + $0x48] sm:$0xff] }
 0x330   :  { %2811 = vmatprep.subr.mxu0 %v856_v5  ;;  %v1391_v5 = vld [vmem:[%s4398_s8 + $0x40] sm:$0xff] }
 0x331   :  { %2812 = vmatpush3.msra.mxu0 %v840_v6  ;;  %v1390_v6 = vld [vmem:[%s4398_s8 + $0x38] sm:$0xff] }
 0x332   :  { %2813 = vmatprep.subr.mxu0 %v855_v7  ;;  %v1389_v7 = vld [vmem:[%s4398_s8 + $0x30] sm:$0xff] }
 0x333   :  { %2814 = vmatpush3.msra.mxu0 %v839_v8  ;;  %v1388_v8 = vld [vmem:[%s4398_s8 + $0x28] sm:$0xff] }
 0x334   :  { %2815 = vmatprep.subr.mxu0 %v854_v9  ;;  %v1387_v9 = vld [vmem:[%s4398_s8 + $0x20] sm:$0xff] }
 0x335   :  { %2816 = vmatpush3.msra.mxu0 %v838_v10  ;;  %v1386_v10 = vld [vmem:[%s4398_s8 + $0x18] sm:$0xff] }
 0x336   :  { %2817 = vmatprep.subr.mxu0 %v853_v11  ;;  %v1385_v11 = vld [vmem:[%s4398_s8 + $0x10] sm:$0xff] }
 0x337   :  { %2818 = vmatpush3.msra.mxu0 %v837_v12  ;;  %v1384_v12 = vld [vmem:[%s4398_s8 + $0x8] sm:$0xff] }
 0x338   :  { %2819 = vmatprep.subr.mxu0 %v852_v13 }
 0x339   :  { %2820 = vmatpush3.msra.mxu0 %v836_v14 }
 0x33a   :  { %2821 = vmatprep.subr.mxu0 %v851_v15 }
 0x33b   :  { %2822 = vmatpush3.msra.mxu0 %v835_v17 }
 0x33c   :  { %2823 = vmatprep.subr.mxu0 %v850_v18 }
 0x33d   :  { %2824 = vmatpush3.msra.mxu0 %v834_v19 }
 0x33e   :  { %2994 = vmatprep.subr.mxu0 %v3532_v16 }
 0x3da   :  { %v829_v20 = vpop.f32.mrf.mxu0 }
 0x3dc   :  { %v831_v21 = vpop.f32.mrf.mxu0 }
 0x3dd   :  { %1109 = vmatprep.mubr.f32.mxu0 %v831_v21  ;;  %v2669_v21 = vld [vmem:[%s4396_s6] ss:$0 sm:$0xff] }
 0x3de   :  { %v937_v22 = vpop.f32.mrf.mxu0  ;;  %1110 = vmatmul.mubr.f32.vlgmr.msra.gmra.mxu0 %v829_v20 }
 0x3df   :  { %2996 = vmatprep.mubr.msk.f32.mxu0 %vm3533_vm2, %v3532_v16 }
 0x3e0   :  { %v939_v23 = vpop.f32.mrf.mxu0 }
 0x3e1   :  { %1039 = vmatprep.mubr.f32.mxu1 %v939_v23 }
 0x3e2   :  { %1040 = vmatmul.mubr.f32.vlgmr.msra.gmra.mxu1 %v937_v22 }
 0x3e3   :  { %1149 = vmatpush1.msra.mxu1 %v3811_v46  ;;  %1184 = vmatprep.mubr.f32.mxu1 %v3532_v16  ;;  %v2642_v46 = vld [vmem:[%s4395_s5 + $0x228] sm:$0xff] }
 0x3e4   :  { %1150 = vmatprep.subr.mxu1 %v3813_v47  ;;  %v2657_v47 = vld [vmem:[%s4395_s5 + $0x2a0] sm:$0xff] }
 0x3e5   :  { %1151 = vmatpush1.msra.mxu1 %v3816_v49  ;;  %v2656_v49 = vld [vmem:[%s4395_s5 + $0x298] sm:$0xff] }
 0x3e6   :  { %2636 = vmatmul.mubr.msk.f32.vlgmr.msra.gmra.mxu1 %vm380_vm1, %v1116_v24  ;;  %2828 = vmatprep.subr.mxu1 %v2668_v25 }
 0x3e7   :  { %2829 = vmatpush3.msra.mxu1 %v2652_v26 }
 0x3e8   :  { %2830 = vmatprep.subr.mxu1 %v2667_v31 }
 0x3e9   :  { %2831 = vmatpush3.msra.mxu1 %v2651_v27  ;;  %v1308_v27 = vld [vmem:[#allocation8] sm:$0xf] }
 0x3ea   :  { %2832 = vmatprep.subr.mxu1 %v2666_v32 }
 0x3eb   :  { %2833 = vmatpush3.msra.mxu1 %v2650_v33  ;;  %v1400_v33 = vld [vmem:[#allocation8 + $0x4] sm:$0xf] }
 0x3ec   :  { %2834 = vmatprep.subr.mxu1 %v2665_v34  ;;  %v2687_v34 = vld [vmem:[%s4398_s8 + $0xf8] sm:$0xff] }
 0x3ed   :  { %2835 = vmatpush3.msra.mxu1 %v2649_v28  ;;  %v2686_v28 = vld [vmem:[%s4398_s8 + $0xf0] sm:$0xff] }
 0x3ee   :  { %2836 = vmatprep.subr.mxu1 %v2664_v35  ;;  %v2685_v35 = vld [vmem:[%s4398_s8 + $0xe8] sm:$0xff] }
 0x3ef   :  { %2837 = vmatpush3.msra.mxu1 %v2648_v36  ;;  %v2684_v36 = vld [vmem:[%s4398_s8 + $0xe0] sm:$0xff] }
 0x3f0   :  { %2838 = vmatprep.subr.mxu1 %v2663_v37  ;;  %v2683_v37 = vld [vmem:[%s4398_s8 + $0xd8] sm:$0xff] }
 0x3f1   :  { %2839 = vmatpush3.msra.mxu1 %v2647_v29  ;;  %v2682_v29 = vld [vmem:[%s4398_s8 + $0xd0] sm:$0xff] }
 0x3f2   :  { %2840 = vmatprep.subr.mxu1 %v2662_v38  ;;  %v2681_v38 = vld [vmem:[%s4398_s8 + $0xc8] sm:$0xff] }
 0x3f3   :  { %2841 = vmatpush3.msra.mxu1 %v2646_v30  ;;  %v2680_v30 = vld [vmem:[%s4398_s8 + $0xc0] sm:$0xff] }
 0x3f4   :  { %2842 = vmatprep.subr.mxu1 %v2661_v39  ;;  %v2679_v39 = vld [vmem:[%s4398_s8 + $0xb8] sm:$0xff] }
 0x3f5   :  { %2843 = vmatpush3.msra.mxu1 %v2645_v40  ;;  %v2678_v40 = vld [vmem:[%s4398_s8 + $0xb0] sm:$0xff] }
 0x3f6   :  { %2844 = vmatprep.subr.mxu1 %v2660_v41  ;;  %v2677_v41 = vld [vmem:[%s4398_s8 + $0xa8] sm:$0xff] }
 0x3f7   :  { %2845 = vmatpush3.msra.mxu1 %v2644_v42  ;;  %v2676_v42 = vld [vmem:[%s4398_s8 + $0xa0] sm:$0xff] }
 0x3f8   :  { %2846 = vmatprep.subr.mxu1 %v2659_v43  ;;  %v2675_v43 = vld [vmem:[%s4398_s8 + $0x98] sm:$0xff] }
 0x3f9   :  { %2847 = vmatpush3.msra.mxu1 %v2643_v44  ;;  %v2674_v44 = vld [vmem:[%s4398_s8 + $0x90] sm:$0xff] }
 0x3fa   :  { %2848 = vmatprep.subr.mxu1 %v2658_v45  ;;  %v1383_v45 = vld [vmem:[%s4398_s8] sm:$0xff] }
 0x3fb   :  { %2849 = vmatpush3.msra.mxu1 %v2642_v46  ;;  %v2673_v46 = vld [vmem:[%s4398_s8 + $0x88] sm:$0xff] }
 0x3fc   :  { %2850 = vmatprep.subr.mxu1 %v2657_v47  ;;  %v2672_v47 = vld [vmem:[%s4398_s8 + $0x80] sm:$0xff] }
 0x3fd   :  { %2851 = vmatpush3.msra.mxu1 %v2641_v48 }
 0x3fe   :  { %2852 = vmatprep.subr.mxu1 %v2656_v49 }
 0x3ff   :  { %2853 = vmatpush3.msra.mxu1 %v2640_v50 }
 0x400   :  { %2854 = vmatprep.subr.mxu1 %v2655_v51 }
 0x401   :  { %2855 = vmatpush3.msra.mxu1 %v2639_v52  ;;  %v1632_v52 = vld [vmem:[#allocation8 + $0x8] sm:$0xf] }
 0x402   :  { %2856 = vmatprep.subr.mxu1 %v2654_v53  ;;  %v2704_v53 = vld [vmem:[%s4398_s8 + $0x178] sm:$0xff] }
 0x403   :  { %2857 = vmatpush3.msra.mxu1 %v2638_v54  ;;  %v2703_v54 = vld [vmem:[%s4398_s8 + $0x170] sm:$0xff] }
 0x404   :  { %2858 = vmatprep.subr.mxu1 %v2653_v55  ;;  %v2702_v55 = vld [vmem:[%s4398_s8 + $0x168] sm:$0xff] }
 0x405   :  { %2859 = vmatpush3.msra.mxu1 %v2637_v56  ;;  %v2701_v56 = vld [vmem:[%s4398_s8 + $0x160] sm:$0xff] }
 0x406   :  { %3039 = vmatprep.subr.mxu1 %v3532_v16 }
 0x49e   :  { %v2825_v13 = vpop.f32.mrf.mxu0 }
 0x4a0   :  { %v2826_v14 = vpop.f32.mrf.mxu0 }
 0x4a1   :  { %v2827_v17 = vadd.f32 %v2826_v14, %v2825_v13  ;;  %v1892_v13 = vld [vmem:[%s4401_s11 + $0x30] sm:$0xff]  ;;  %v1891_v14 = vld [vmem:[%s4401_s11 + $0x28] sm:$0xff] }
 0x4a2   :  { %v2790_v57 = vpop.f32.mrf.mxu1 }
 0x4a4   :  { %v2791_v58 = vpop.f32.mrf.mxu1 }
 0x4a5   :  { %v2792_v59 = vadd.f32 %v2791_v58, %v2790_v57  ;;  %v2700_v57 = vld [vmem:[%s4398_s8 + $0x158] sm:$0xff]  ;;  %v2699_v58 = vld [vmem:[%s4398_s8 + $0x150] sm:$0xff] }
 0x4a6   :  { %v1186_v60 = vpop.f32.mrf.mxu1 }
 0x4a7   :  { %v1112_v19 = vadd.f32 %v2827_v17, %v2792_v59  ;;  %v2698_v59 = vld [vmem:[%s4398_s8 + $0x148] sm:$0xff]  ;;  %v1889_v17 = vld [vmem:[%s4401_s11 + $0x18] sm:$0xff] }
 0x4a8   :  { %v1188_v61 = vpop.f32.mrf.mxu1 }
 0x4a9   :  { %1288 = vmatprep.mubr.f32.mxu1 %v1188_v61  ;;  %v2696_v61 = vld [vmem:[%s4398_s8 + $0x138] sm:$0xff] }
 0x4aa   :  { %1289 = vmatmul.mubr.f32.vlgmr.msra.gmra.mxu1 %v1186_v60  ;;  %v2697_v60 = vld [vmem:[%s4398_s8 + $0x140] sm:$0xff] }
 0x4ab   :  { %3071 = vmatprep.mubr.msk.f32.mxu1 %vm3533_vm2, %v3532_v16  ;;  %3040 = vmatpush3.msra.mxu1 %v1398_v62  ;;  %v2695_v62 = vld [vmem:[%s4398_s8 + $0x130] sm:$0xff] }
 0x4ac   :  { %3041 = vmatprep.subr.mxu1 %v3532_v16 }
 0x4ad   :  { %3042 = vmatpush3.msra.mxu1 %v1397_v63  ;;  %v2694_v63 = vld [vmem:[%s4398_s8 + $0x128] sm:$0xff] }
 0x4ae   :  { %3043 = vmatprep.subr.mxu1 %v3532_v16 }
 0x4af   :  { %3044 = vmatpush3.msra.mxu1 %v1396_v0  ;;  %v2693_v0 = vld [vmem:[%s4398_s8 + $0x120] sm:$0xff] }
 0x4b0   :  { %3045 = vmatprep.subr.mxu1 %v3532_v16 }
 0x4b1   :  { %3046 = vmatpush3.msra.mxu1 %v1395_v1  ;;  %v2692_v1 = vld [vmem:[%s4398_s8 + $0x118] sm:$0xff] }
 0x4b2   :  { %3047 = vmatprep.subr.mxu1 %v3532_v16 }
 0x4b3   :  { %3048 = vmatpush3.msra.mxu1 %v1394_v2  ;;  %v2691_v2 = vld [vmem:[%s4398_s8 + $0x110] sm:$0xff] }
 0x4b4   :  { %3049 = vmatprep.subr.mxu1 %v3532_v16 }
 0x4b5   :  { %3050 = vmatpush3.msra.mxu1 %v1393_v3  ;;  %v2690_v3 = vld [vmem:[%s4398_s8 + $0x108] sm:$0xff] }
 0x4b6   :  { %3051 = vmatprep.subr.mxu1 %v3532_v16 }
 0x4b7   :  { %3052 = vmatpush3.msra.mxu1 %v1392_v4  ;;  %v2689_v4 = vld [vmem:[%s4398_s8 + $0x100] sm:$0xff] }
 0x4b8   :  { %3053 = vmatprep.subr.mxu1 %v3532_v16 }
 0x4b9   :  { %3054 = vmatpush3.msra.mxu1 %v1391_v5 }
 0x4ba   :  { %3055 = vmatprep.subr.mxu1 %v3532_v16 }
 0x4bb   :  { %3056 = vmatpush3.msra.mxu1 %v1390_v6 }
 0x4bc   :  { %3057 = vmatprep.subr.mxu1 %v3532_v16 }
 0x4bd   :  { %3058 = vmatpush3.msra.mxu1 %v1389_v7 }
 0x4be   :  { %3059 = vmatprep.subr.mxu1 %v3532_v16 }
 0x4bf   :  { %3060 = vmatpush3.msra.mxu1 %v1388_v8 }
 0x4c0   :  { %3061 = vmatprep.subr.mxu1 %v3532_v16 }
 0x4c1   :  { %3062 = vmatpush3.msra.mxu1 %v1387_v9 }
 0x4c2   :  { %3063 = vmatprep.subr.mxu1 %v3532_v16 }
 0x4c3   :  { %3064 = vmatpush3.msra.mxu1 %v1386_v10 }
 0x4c4   :  { %3065 = vmatprep.subr.mxu1 %v3532_v16 }
 0x4c5   :  { %3066 = vmatpush3.msra.mxu1 %v1385_v11 }
 0x4c6   :  { %3067 = vmatprep.subr.mxu1 %v3532_v16 }
 0x4c7   :  { %3068 = vmatpush3.msra.mxu1 %v1384_v12  ;;  %v1893_v12 = vld [vmem:[%s4401_s11 + $0x38] sm:$0xff] }
 0x4c8   :  { %3069 = vmatprep.subr.mxu1 %v3532_v16 }
 0x4c9   :  { %3070 = vmatpush3.msra.mxu1 %v1383_v45  ;;  %v2126_v45 = vld [vmem:[#allocation11 + $0x4] sm:$0x3] }
 0x4ca   :  { %3114 = vmatprep.subr.mxu1 %v3532_v16 }
 0x56a   :  { %v2860_v15 = vpop.f32.mrf.mxu1 }
 0x56c   :  { %v2861_v18 = vpop.f32.mrf.mxu1 }
 0x56d   :  { %v2862_v20 = vadd.f32 %v2861_v18, %v2860_v15  ;;  %v1890_v15 = vld [vmem:[%s4401_s11 + $0x20] sm:$0xff]  ;;  %v1888_v18 = vld [vmem:[%s4401_s11 + $0x10] sm:$0xff] }
 0x56f   :  { %v1294_v22 = vadd.f32 %v2862_v20, %v1112_v19  ;;  %v1887_v19 = vld [vmem:[%s4401_s11 + $0x8] sm:$0xff] }
 0x571   :  { %v1302_v23 = vadd.f32 %v2669_v21, %v1294_v22  ;;  %v2705_v21 = vld [vmem:[#allocation10] ss:$0 sm:$0xff] }
 0x573   :  { %v1303_v24 = vsub.f32 0.0, %v1302_v23 }
 0x575   :  { %v1304_v25 = vmul.f32 1.442695, %v1303_v24 }
 0x577   :  { %3243 = vpow2.f32 %v1304_v25 }
 0x584   :  { %v3244_v26 = vpop.eup %3243 }
 0x585   :  { %v1306_v31 = vadd.f32 1.0, %v3244_v26 }
 0x587   :  { %3245 = vrcp.f32 %v1306_v31 }
 0x594   :  { %v4092_v32 = vpop.eup %3245 }
 0x595   :  { %2995 = vmatpush3.msra.mxu0 %v4092_v32 }
 0x596   :  { %2997 = vmatmul.mubr.msk.f32.vlgmr.msra.gmra.mxu0 %vm1309_vm3, %v1308_v27  ;;  %2999 = vmatprep.subr.mxu0 %v3532_v16 }
 0x597   :  { %3000 = vmatpush3.msra.mxu0 %v4092_v32  ;;  %3001 = vmatprep.mubr.msk.f32.mxu0 %vm3533_vm2, %v3532_v16 }
 0x598   :  { %3004 = vmatprep.subr.mxu0 %v3532_v16 }
 0x59a   :  { %3002 = vmatmul.mubr.msk.f32.vlgmr.msra.gmra.mxu0 %vm1309_vm3, %v1400_v33 }
 0x59b   :  { %3005 = vmatpush3.msra.mxu0 %v2687_v34  ;;  %3036 = vmatprep.mubr.msk.f32.mxu0 %vm3533_vm2, %v3532_v16  ;;  %v1895_v34 = vld [vmem:[#allocation11 + $0x2] sm:$0x3] }
 0x59c   :  { %3006 = vmatprep.subr.mxu0 %v3532_v16 }
 0x59d   :  { %3007 = vmatpush3.msra.mxu0 %v2686_v28  ;;  %v2717_v28 = vld [vmem:[%s4401_s11 + $0x78] sm:$0xff] }
 0x59e   :  { %3008 = vmatprep.subr.mxu0 %v3532_v16 }
 0x59f   :  { %3009 = vmatpush3.msra.mxu0 %v2685_v35  ;;  %v2716_v35 = vld [vmem:[%s4401_s11 + $0x70] sm:$0xff] }
 0x5a0   :  { %3010 = vmatprep.subr.mxu0 %v3532_v16 }
 0x5a1   :  { %3011 = vmatpush3.msra.mxu0 %v2684_v36  ;;  %v2715_v36 = vld [vmem:[%s4401_s11 + $0x68] sm:$0xff] }
 0x5a2   :  { %3012 = vmatprep.subr.mxu0 %v3532_v16 }
 0x5a3   :  { %3013 = vmatpush3.msra.mxu0 %v2683_v37  ;;  %v2714_v37 = vld [vmem:[%s4401_s11 + $0x60] sm:$0xff] }
 0x5a4   :  { %3014 = vmatprep.subr.mxu0 %v3532_v16 }
 0x5a5   :  { %3015 = vmatpush3.msra.mxu0 %v2682_v29  ;;  %v2713_v29 = vld [vmem:[%s4401_s11 + $0x58] sm:$0xff] }
 0x5a6   :  { %3016 = vmatprep.subr.mxu0 %v3532_v16 }
 0x5a7   :  { %3017 = vmatpush3.msra.mxu0 %v2681_v38  ;;  %v2712_v38 = vld [vmem:[%s4401_s11 + $0x50] sm:$0xff] }
 0x5a8   :  { %3018 = vmatprep.subr.mxu0 %v3532_v16 }
 0x5a9   :  { %3019 = vmatpush3.msra.mxu0 %v2680_v30  ;;  %v1886_v30 = vld [vmem:[%s4401_s11] sm:$0xff] }
 0x5aa   :  { %3020 = vmatprep.subr.mxu0 %v3532_v16 }
 0x5ab   :  { %3021 = vmatpush3.msra.mxu0 %v2679_v39  ;;  %v2711_v39 = vld [vmem:[%s4401_s11 + $0x48] sm:$0xff] }
 0x5ac   :  { %3022 = vmatprep.subr.mxu0 %v3532_v16 }
 0x5ad   :  { %3023 = vmatpush3.msra.mxu0 %v2678_v40  ;;  %v2710_v40 = vld [vmem:[%s4401_s11 + $0x40] sm:$0xff] }
 0x5ae   :  { %3024 = vmatprep.subr.mxu0 %v3532_v16 }
 0x5af   :  { %3025 = vmatpush3.msra.mxu0 %v2677_v41 }
 0x5b0   :  { %3026 = vmatprep.subr.mxu0 %v3532_v16 }
 0x5b1   :  { %3027 = vmatpush3.msra.mxu0 %v2676_v42 }
 0x5b2   :  { %3028 = vmatprep.subr.mxu0 %v3532_v16 }
 0x5b3   :  { %3029 = vmatpush3.msra.mxu0 %v2675_v43 }
 0x5b4   :  { %3030 = vmatprep.subr.mxu0 %v3532_v16 }
 0x5b5   :  { %3031 = vmatpush3.msra.mxu0 %v2674_v44 }
 0x5b6   :  { %3032 = vmatprep.subr.mxu0 %v3532_v16 }
 0x5b7   :  { %3033 = vmatpush3.msra.mxu0 %v2673_v46  ;;  %v2729_v46 = vld [vmem:[%s4401_s11 + $0xb8] sm:$0xff] }
 0x5b8   :  { %3034 = vmatprep.subr.mxu0 %v3532_v16 }
 0x5b9   :  { %3035 = vmatpush3.msra.mxu0 %v2672_v47  ;;  %v2728_v47 = vld [vmem:[%s4401_s11 + $0xb0] sm:$0xff] }
 0x5ba   :  { %3074 = vmatprep.subr.mxu0 %v3532_v16 }
 0x656   :  { %v1379_v48 = vpop.f32.mrf.mxu0 }
 0x657   :  { %3072 = vmatmul.mubr.f32.vlgmr.msra.gmra.mxu1 %v1379_v48  ;;  %v2727_v48 = vld [vmem:[%s4401_s11 + $0xa8] sm:$0xff] }
 0x658   :  { %v2998_v49 = vpop.f32.mrf.mxu0  ;;  %3116 = vmatprep.mubr.msk.f32.mxu1 %vm3533_vm2, %v3532_v16 }
 0x659   :  { %v2726_v49 = vld [vmem:[%s4401_s11 + $0xa0] sm:$0xff] }
 0x65a   :  { %v1470_v50 = vpop.f32.mrf.mxu0 }
 0x65b   :  { %3037 = vmatmul.mubr.f32.vlgmr.msra.gmra.mxu0 %v1470_v50  ;;  %v2725_v50 = vld [vmem:[%s4401_s11 + $0x98] sm:$0xff] }
 0x65c   :  { %3075 = vmatpush3.msra.mxu0 %v4092_v32  ;;  %v3003_v51 = vpop.f32.mrf.mxu0  ;;  %3076 = vmatprep.mubr.msk.f32.mxu0 %vm3533_vm2, %v3532_v16  ;;  %v1807_v32 = vld [vmem:[#allocation11] sm:$0x3] }
 0x65d   :  { %3079 = vmatprep.subr.mxu0 %v3532_v16  ;;  %v2724_v51 = vld [vmem:[%s4401_s11 + $0x90] sm:$0xff] }
 0x65f   :  { %3077 = vmatmul.mubr.msk.f32.vlgmr.msra.gmra.mxu0 %vm1309_vm3, %v1632_v52  ;;  %v2723_v52 = vld [vmem:[%s4401_s11 + $0x88] sm:$0xff] }
 0x660   :  { %3080 = vmatpush3.msra.mxu0 %v2704_v53  ;;  %3111 = vmatprep.mubr.msk.f32.mxu0 %vm3533_vm2, %v3532_v16  ;;  %v2722_v53 = vld [vmem:[%s4401_s11 + $0x80] sm:$0xff] }
 0x661   :  { %3081 = vmatprep.subr.mxu0 %v3532_v16 }
 0x662   :  { %3082 = vmatpush3.msra.mxu0 %v2703_v54 }
 0x663   :  { %3083 = vmatprep.subr.mxu0 %v3532_v16 }
 0x664   :  { %3084 = vmatpush3.msra.mxu0 %v2702_v55 }
 0x665   :  { %3085 = vmatprep.subr.mxu0 %v3532_v16 }
 0x666   :  { %3086 = vmatpush3.msra.mxu0 %v2701_v56 }
 0x667   :  { %3087 = vmatprep.subr.mxu0 %v3532_v16 }
 0x668   :  { %3088 = vmatpush3.msra.mxu0 %v2700_v57 }
 0x669   :  { %3089 = vmatprep.subr.mxu0 %v3532_v16 }
 0x66a   :  { %3090 = vmatpush3.msra.mxu0 %v2699_v58 }
 0x66b   :  { %3091 = vmatprep.subr.mxu0 %v3532_v16 }
 0x66c   :  { %3092 = vmatpush3.msra.mxu0 %v2698_v59 }
 0x66d   :  { %3093 = vmatprep.subr.mxu0 %v3532_v16 }
 0x66e   :  { %3094 = vmatpush3.msra.mxu0 %v2697_v60 }
 0x66f   :  { %3095 = vmatprep.subr.mxu0 %v3532_v16 }
 0x670   :  { %3096 = vmatpush3.msra.mxu0 %v2696_v61 }
 0x671   :  { %3097 = vmatprep.subr.mxu0 %v3532_v16 }
 0x672   :  { %3098 = vmatpush3.msra.mxu0 %v2695_v62  ;;  %v2731_v62 = vld [vmem:[#allocation13] ss:$0 sm:$0xff] }
 0x673   :  { %3099 = vmatprep.subr.mxu0 %v3532_v16 }
 0x674   :  { %3100 = vmatpush3.msra.mxu0 %v2694_v63 }
 0x675   :  { %3101 = vmatprep.subr.mxu0 %v3532_v16 }
 0x676   :  { %3102 = vmatpush3.msra.mxu0 %v2693_v0 }
 0x677   :  { %3103 = vmatprep.subr.mxu0 %v3532_v16 }
 0x678   :  { %3104 = vmatpush3.msra.mxu0 %v2692_v1 }
 0x679   :  { %3105 = vmatprep.subr.mxu0 %v3532_v16 }
 0x67a   :  { %3106 = vmatpush3.msra.mxu0 %v2691_v2 }
 0x67b   :  { %3107 = vmatprep.subr.mxu0 %v3532_v16 }
 0x67c   :  { %3108 = vmatpush3.msra.mxu0 %v2690_v3 }
 0x67d   :  { %3109 = vmatprep.subr.mxu0 %v3532_v16 }
 0x67e   :  { %3110 = vmatpush3.msra.mxu0 %v2689_v4 }
 0x67f   :  { %3143 = vmatprep.subr.mxu0 %v3532_v16 }
 0x717   :  { %v1627_v5 = vpop.f32.mrf.mxu1 }
 0x719   :  { %v3073_v6 = vpop.f32.mrf.mxu1 }
 0x71a   :  { %v2296_v6 = vld [vmem:[#allocation14] sm:$0x3] }
 0x71b   :  { %v1557_v7 = vpop.f32.mrf.mxu0 }
 0x71c   :  { %v1628_v8 = vadd.f32 %v1627_v5, %v1557_v7 }
 0x71d   :  { %v3038_v9 = vpop.f32.mrf.mxu0 }
 0x71e   :  { %v2375_v9 = vld [vmem:[%s4404_s14] sm:$0xff] }
 0x71f   :  { %v1702_v10 = vpop.f32.mrf.mxu0 }
 0x720   :  { %3112 = vmatmul.mubr.f32.vlgmr.msra.gmra.mxu0 %v1702_v10 }
 0x721   :  { %v3078_v11 = vpop.f32.mrf.mxu0  ;;  %3159 = vmatprep.mubr.msk.f32.mxu0 %vm3533_vm2, %v3532_v16  ;;  %3144 = vmatpush3.msra.mxu0 %v1893_v12 }
 0x722   :  { %3145 = vmatprep.subr.mxu0 %v3532_v16 }
 0x723   :  { %3146 = vmatpush3.msra.mxu0 %v1892_v13 }
 0x724   :  { %3147 = vmatprep.subr.mxu0 %v3532_v16 }
 0x725   :  { %3148 = vmatpush3.msra.mxu0 %v1891_v14  ;;  %v2470_v14 = vld [vmem:[#allocation17 + $0x8] sm:$0x3] }
 0x726   :  { %3149 = vmatprep.subr.mxu0 %v3532_v16 }
 0x727   :  { %3150 = vmatpush3.msra.mxu0 %v1890_v15  ;;  %v2469_v15 = vld [vmem:[#allocation17] sm:$0xff] }
 0x728   :  { %3151 = vmatprep.subr.mxu0 %v3532_v16 }
 0x729   :  { %3152 = vmatpush3.msra.mxu0 %v1889_v17  ;;  %v2736_v17 = vld [vmem:[#allocation16] ss:$0 sm:$0xff] }
 0x72a   :  { %3153 = vmatprep.subr.mxu0 %v3532_v16 }
 0x72b   :  { %3154 = vmatpush3.msra.mxu0 %v1888_v18 }
 0x72c   :  { %3155 = vmatprep.subr.mxu0 %v3532_v16 }
 0x72d   :  { %3156 = vmatpush3.msra.mxu0 %v1887_v19 }
 0x72e   :  { %3157 = vmatprep.subr.mxu0 %v3532_v16 }
 0x72f   :  { %3158 = vmatpush3.msra.mxu0 %v1886_v30 }
 0x730   :  { %3186 = vmatprep.subr.mxu0 %v3532_v16 }
 0x7e0   :  { %v1789_v20 = vpop.f32.mrf.mxu0 }
 0x7e1   :  { %v1793_v22 = vadd.f32 %v1789_v20, %v1628_v8  ;;  %v2376_v8 = vld [vmem:[%s4404_s14 + $0x8] sm:$0x3]  ;;  %s3534_s14 = smov [#allocation20]  }
 0x7e2   :  { %v3113_v23 = vpop.f32.mrf.mxu0  ;;  %s2572_s2 = sshll.u32 %s3534_s14, 4  ;;  %s2573_s2 = int_to_ptr.vmem [resolvable:$true] %s2572_s2 }
 0x7e3   :  { %v1801_v24 = vadd.f32 %v2705_v21, %v1793_v22  ;;  %s3479_s16 = scalar_lea.vmem %s2573_s2, 32  ;;  %p3484_p0 = scmp.lt.s32.totalorder %s2573_s2, %s2573_s2 }
 0x7e4   :  { %p3480_p13 = scmp.ne.s32.totalorder %s2573_s2, %s3479_s16  ;;  %p3485_p1 = scmp.lt.s32.totalorder %s3479_s16, %s3479_s16 }
 0x7e5   :  { %v1802_v25 = vsub.f32 0.0, %v1801_v24  ;;  %v2737_v24 = vld [vmem:[#allocation19] ss:$0 sm:$0xff] }
 0x7e6   :  { %p3486_p2 = por %p3485_p1, %p3484_p0 }
 0x7e7   :  { %v1803_v26 = vmul.f32 1.442695, %v1802_v25 }
 0x7e8   :  { %p3487_p3 = pnand %p3486_p2, %p3480_p13 }
 0x7e9   :  { %3247 = vpow2.f32 %v1803_v26 }
 0x7f6   :  { %v3248_v31 = vpop.eup %3247 }
 0x7f7   :  { %v1805_v27 = vadd.f32 1.0, %v3248_v31 }
 0x7f9   :  { %3249 = vrcp.f32 %v1805_v27 }
 0x806   :  { %v3250_v33 = vpop.eup %3249 }
 0x807   :  { %3115 = vmatpush3.msk.msra.mxu1 %vm1812_vm4, %v3250_v33 }
 0x808   :  { %3117 = vmatmul.mubr.msk.f32.vlgmr.msra.gmra.mxu1 %vm1808_vm5, %v1807_v32  ;;  %3119 = vmatprep.subr.mxu1 %v3532_v16 }
 0x809   :  { %3120 = vmatpush3.msk.msra.mxu1 %vm1812_vm4, %v3250_v33  ;;  %3121 = vmatprep.mubr.msk.f32.mxu1 %vm3533_vm2, %v3532_v16 }
 0x80a   :  { %3124 = vmatprep.subr.mxu1 %v3532_v16 }
 0x80c   :  { %3122 = vmatmul.mubr.msk.f32.vlgmr.msra.gmra.mxu1 %vm1808_vm5, %v1895_v34 }
 0x80d   :  { %3125 = vmatpush3.msra.mxu1 %v2717_v28  ;;  %3140 = vmatprep.mubr.msk.f32.mxu1 %vm3533_vm2, %v3532_v16 }
 0x80e   :  { %3126 = vmatprep.subr.mxu1 %v3532_v16 }
 0x80f   :  { %3127 = vmatpush3.msra.mxu1 %v2716_v35 }
 0x810   :  { %3128 = vmatprep.subr.mxu1 %v3532_v16 }
 0x811   :  { %3129 = vmatpush3.msra.mxu1 %v2715_v36 }
 0x812   :  { %3130 = vmatprep.subr.mxu1 %v3532_v16 }
 0x813   :  { %3131 = vmatpush3.msra.mxu1 %v2714_v37 }
 0x814   :  { %3132 = vmatprep.subr.mxu1 %v3532_v16 }
 0x815   :  { %3133 = vmatpush3.msra.mxu1 %v2713_v29 }
 0x816   :  { %3134 = vmatprep.subr.mxu1 %v3532_v16 }
 0x817   :  { %3135 = vmatpush3.msra.mxu1 %v2712_v38 }
 0x818   :  { %3136 = vmatprep.subr.mxu1 %v3532_v16 }
 0x819   :  { %3137 = vmatpush3.msra.mxu1 %v2711_v39 }
 0x81a   :  { %3138 = vmatprep.subr.mxu1 %v3532_v16 }
 0x81b   :  { %3139 = vmatpush3.msra.mxu1 %v2710_v40 }
 0x81c   :  { %3162 = vmatprep.subr.mxu1 %v3532_v16 }
 0x8c8   :  { %v1882_v41 = vpop.f32.mrf.mxu1 }
 0x8c9   :  { %3160 = vmatmul.mubr.msk.f32.vlgmr.msra.gmra.mxu0 %vm1978_vm6, %v1882_v41 }
 0x8ca   :  { %v3118_v42 = vpop.f32.mrf.mxu1  ;;  %3188 = vmatprep.mubr.msk.f32.mxu0 %vm3533_vm2, %v3532_v16 }
 0x8cc   :  { %v1965_v43 = vpop.f32.mrf.mxu1 }
 0x8cd   :  { %3141 = vmatmul.mubr.msk.f32.vlgmr.msra.gmra.mxu1 %vm1978_vm6, %v1965_v43 }
 0x8ce   :  { %3163 = vmatpush3.msk.msra.mxu1 %vm1812_vm4, %v3250_v33  ;;  %v3123_v44 = vpop.f32.mrf.mxu1  ;;  %3164 = vmatprep.mubr.msk.f32.mxu1 %vm3533_vm2, %v3532_v16 }
 0x8cf   :  { %3167 = vmatprep.subr.mxu1 %v3532_v16 }
 0x8d1   :  { %3165 = vmatmul.mubr.msk.f32.vlgmr.msra.gmra.mxu1 %vm1808_vm5, %v2126_v45 }
 0x8d2   :  { %3168 = vmatpush3.msra.mxu1 %v2729_v46  ;;  %3183 = vmatprep.mubr.msk.f32.mxu1 %vm3533_vm2, %v3532_v16 }
 0x8d3   :  { %3169 = vmatprep.subr.mxu1 %v3532_v16 }
 0x8d4   :  { %3170 = vmatpush3.msra.mxu1 %v2728_v47 }
 0x8d5   :  { %3171 = vmatprep.subr.mxu1 %v3532_v16 }
 0x8d6   :  { %3172 = vmatpush3.msra.mxu1 %v2727_v48 }
 0x8d7   :  { %3173 = vmatprep.subr.mxu1 %v3532_v16 }
 0x8d8   :  { %3174 = vmatpush3.msra.mxu1 %v2726_v49 }
 0x8d9   :  { %3175 = vmatprep.subr.mxu1 %v3532_v16 }
 0x8da   :  { %3176 = vmatpush3.msra.mxu1 %v2725_v50 }
 0x8db   :  { %3177 = vmatprep.subr.mxu1 %v3532_v16 }
 0x8dc   :  { %3178 = vmatpush3.msra.mxu1 %v2724_v51 }
 0x8dd   :  { %3179 = vmatprep.subr.mxu1 %v3532_v16 }
 0x8de   :  { %3180 = vmatpush3.msra.mxu1 %v2723_v52 }
 0x8df   :  { %3181 = vmatprep.subr.mxu1 %v3532_v16 }
 0x8e0   :  { %3182 = vmatpush3.msra.mxu1 %v2722_v53 }
 0x989   :  { %v2121_v54 = vpop.f32.mrf.mxu0 }
 0x98b   :  { %v3161_v55 = vpop.f32.mrf.mxu0 }
 0x98d   :  { %v2048_v56 = vpop.f32.mrf.mxu1 }
 0x98e   :  { %v2122_v57 = vadd.f32 %v2121_v54, %v2048_v56 }
 0x98f   :  { %v3142_v58 = vpop.f32.mrf.mxu1 }
 0x991   :  { %v2196_v59 = vpop.f32.mrf.mxu1 }
 0x992   :  { %3184 = vmatmul.mubr.msk.f32.vlgmr.msra.gmra.mxu1 %vm1978_vm6, %v2196_v59 }
 0x993   :  { %v3166_v60 = vpop.f32.mrf.mxu1 }
 0xa52   :  { %v2278_v61 = vpop.f32.mrf.mxu1 }
 0xa53   :  { %v2282_v63 = vadd.f32 %v2278_v61, %v2122_v57 }
 0xa54   :  { %v3185_v0 = vpop.f32.mrf.mxu1 }
 0xa55   :  { %v2290_v1 = vadd.f32 %v2731_v62, %v2282_v63 }
 0xa57   :  { %v2291_v2 = vsub.f32 0.0, %v2290_v1 }
 0xa59   :  { %v2292_v3 = vmul.f32 1.442695, %v2291_v2 }
 0xa5b   :  { %3251 = vpow2.f32 %v2292_v3 }
 0xa68   :  { %v3252_v4 = vpop.eup %3251 }
 0xa69   :  { %v2294_v5 = vadd.f32 1.0, %v3252_v4 }
 0xa6b   :  { %3253 = vrcp.f32 %v2294_v5 }
 0xa78   :  { %v3254_v7 = vpop.eup %3253 }
 0xa79   :  { %3187 = vmatpush3.msk.msra.mxu0 %vm2301_vm7, %v3254_v7 }
 0xa7a   :  { %3189 = vmatmul.mubr.msk.f32.vlgmr.msra.gmra.mxu0 %vm2297_vm8, %v2296_v6  ;;  %3191 = vmatprep.subr.mxu0 %v3532_v16 }
 0xa7b   :  { %3192 = vmatpush3.msk.msra.mxu0 %vm2301_vm7, %v2376_v8  ;;  %3195 = vmatprep.mubr.msk.f32.mxu0 %vm3533_vm2, %v3532_v16 }
 0xa7c   :  { %3193 = vmatprep.subr.mxu0 %v3532_v16 }
 0xa7d   :  { %3194 = vmatpush3.msra.mxu0 %v2375_v9 }
 0xa7e   :  { %3198 = vmatprep.subr.mxu0 %v3532_v16 }
 0xb3a   :  { %v2371_v10 = vpop.f32.mrf.mxu0 }
 0xb3b   :  { %3196 = vmatmul.mubr.msk.f32.vlgmr.msra.gmra.mxu0 %vm2377_vm9, %v2371_v10  ;;  %v2454_v11 = vmul.f32 %v2371_v10, %v2371_v10 }
 0xb3c   :  { %v3190_v12 = vpop.f32.mrf.mxu0  ;;  %3202 = vmatprep.mubr.msk.f32.mxu0 %vm3533_vm2, %v3532_v16  ;;  %3199 = vmatpush3.msk.msra.mxu0 %vm2301_vm7, %v2470_v14 }
 0xb3d   :  { %v2456_v13 = vsel %vm2455_vm10, %v2454_v11, 0.0  ;;  %3200 = vmatprep.subr.mxu0 %v3532_v16 }
 0xb3e   :  { %2457 = vadd.xlane.f32.xlu0 %v2456_v13  ;;  %3201 = vmatpush3.msra.mxu0 %v2469_v15 }
 0xbc7   :  { %v2458_v18 = vpop.xlane.xlu0 %2457 }
 0xbc8   :  { %v2466_v20 = vadd.f32 %v2736_v17, %v2458_v18 }
 0xbfb   :  { %v2450_v19 = vpop.f32.mrf.mxu0 }
 0xbfc   :  { %v2467_v21 = vmul.f32 2.0, %v2450_v19 }
 0xbfd   :  { %v3197_v22 = vpop.f32.mrf.mxu0 }
 0xbfe   :  { %v2468_v23 = vsub.f32 %v2466_v20, %v2467_v21 }
 0xc00   :  { %3203 = vmatmul.mubr.msk.f32.vlgmr.msra.gmra.mxu0 %vm2377_vm9, %v2468_v23 }
 0xcc0   :  { %v2550_v25 = vpop.f32.mrf.mxu0 }
 0xcc1   :  { %v2551_v26 = vadd.f32 %v2737_v24, %v2550_v25 }
 0xcc2   :  { %v3204_v31 = vpop.f32.mrf.mxu0 }
 0xcc3   :  { %v2554_v27 = vsel %vm2455_vm10, %v2551_v26, -inf }
 0xcc4   :  { %2555 = vmax.xlane.f32.xlu0 %v2554_v27 }
 0xd4d   :  { %v2556_v32 = vpop.xlane.xlu0 %2555 }
 0xd4e   :  { %v2557_v33 = vsub.f32 %v2551_v26, %v2556_v32 }
 0xd50   :  { %v2558_v16 = vmul.f32 1.442695, %v2557_v33 }
 0xd52   :  { %3255 = vpow2.f32 %v2558_v16 }
 0xd5f   :  { %v3256_v34 = vpop.eup %3255 }
 0xd60   :  { %v2560_v28 = vsel %vm2455_vm10, %v3256_v34, 0.0 }
 0xd61   :  { %2561 = vadd.xlane.f32.xlu1 %v2560_v28 }
 0xdea   :  { %v2562_v35 = vpop.xlane.xlu1 %2561 }
 0xdeb   :  { %3257 = vrcp.f32 %v2562_v35 }
 0xdf8   :  { %v3258_v36 = vpop.eup %3257 }
 0xdf9   :  { %v2564_v37 = vmul.f32 %v3258_v36, %v3256_v34 }
 0xdfb   :  { %2565 = vst.msk [vmem:[#allocation20] sm:$0x3] %vm2455_vm10, %v2564_v37 }
 0xdfc   :  { %3490 = shalt.err (!%p3487_p3)
}
 0xdfd   :  { %2575 = dma.vmem_to_hbm [thread:$0]  %s2573_s2, 32, %s4408_s18, [#allocation4]  }
 0xdfe   :  { %3511 = dma.done.wait [#allocation4], 32  }
 0xdff   :  { %3512 = vsyncadd [#allocation4], 4294967264 }
 0xe00   :  { %2579 = vsyncpa [#allocation3], 1 }
 0xe01   :  { %2580 = vsyncpa [#allocation6], 1 }
 0xe02   :  { %2581 = vsyncpa [#allocation9], 1 }
 0xe03   :  { %2582 = vsyncpa [#allocation12], 1 }
 0xe04   :  { %2583 = vsyncpa [#allocation15], 1 }
 0xe05   :  { %2584 = vsyncpa [#allocation18], 1 }
 0xe06   :  { %2585 = vsyncpa [#allocation4], 1 }

</bundles_post_ra>
